<compile_context>
chip_gen: v7x
topology: tpu7x:2x2x1
jax: 0.10.0
libtpu: 0.0.40
codegen_flags: <defaults>
</compile_context>

<pallas_src>
import functools

import jax
import jax.numpy as jnp
from jax import lax
from jax.experimental import pallas as pl
from jax.experimental.pallas import tpu as pltpu


def _round_up(x, m):
    return ((x + m - 1) // m) * m


def _pick_row_tile(ho, bytes_per_row, budget_bytes):
    """Largest divisor of `ho` whose per-tile working set fits the budget."""
    # TODO(synk): masked last tile so the row tile need not divide Ho exactly.
    best = 1
    for t in range(1, ho + 1):
        if ho % t == 0 and t * bytes_per_row <= budget_bytes:
            best = t
    return best


def _default_vmem_limit_bytes():
    """Generation-aware scoped-VMEM limit: spend most of the 128 MiB on
    v5e/v6e; stay at 48 MiB where per-core VMEM is only 64 MiB (v7x)."""
    limit = 48 * 1024 * 1024
    try:
        cap = int(pltpu.get_tpu_info().vmem_capacity_bytes)
        if cap >= 128 * 1024 * 1024:
            limit = 100 * 1024 * 1024
    except Exception:
        pass
    return limit


def _conv_stats_kernel(x_ref, w_ref, y_ref, sum_ref, sq_ref, xpad_ref, *,
                       H, W, Cin, Cout, KH, KW, dil, pad, TH, Wo, Wp_pad):
    """Dilated conv (one batch element, TH output rows per step) + BN partials.

    x_ref   : (1, H, W, Cin)      bf16 NHWC input block (resident per n)
    w_ref   : (KH*KW, Cin, Cout)  repacked bf16 weight (resident for the grid)
    y_ref   : (1, TH, Wo, Cout)   f32 conv output tile
    sum_ref : (1, 1, 1, Cout)     f32 per-(n, tile) channel-sum partial
    sq_ref  : (1, 1, 1, Cout)     f32 per-(n, tile) channel-sum-of-squares partial
    xpad_ref: (Hp, Wp_pad, Cin)   bf16 zero-padded image scratch (VMEM)
    """
    hi = pl.program_id(1)
    Hp = H + 2 * pad

    # Build the padded image once per batch element; it stays resident in VMEM
    # across the row tiles.  Only the halo (and the sublane-alignment columns)
    # is zeroed -- the interior is overwritten with the input block directly.
    @pl.when(hi == 0)
    def _build_padded():
        zdt = xpad_ref.dtype
        if pad > 0:
            xpad_ref[0:pad, :, :] = jnp.zeros((pad, Wp_pad, Cin), zdt)
            xpad_ref[pad + H:Hp, :, :] = jnp.zeros((pad, Wp_pad, Cin), zdt)
            xpad_ref[pad:pad + H, 0:pad, :] = jnp.zeros((H, pad, Cin), zdt)
        right = Wp_pad - (pad + W)
        if right > 0:
            xpad_ref[pad:pad + H, pad + W:Wp_pad, :] = jnp.zeros((H, right, Cin), zdt)
        xpad_ref[pad:pad + H, pad:pad + W, :] = x_ref[0]

    r0 = pl.multiple_of(hi * TH, TH)
    L = TH * Wp_pad

    # One aligned full-width bf16 band per kh (slice along the major H axis
    # only; Wp_pad % 8 == 0 keeps the flattening reshape layout-preserving).
    bands = []
    for kh in range(KH):
        band = xpad_ref[pl.ds(r0 + kh * dil, TH), :, :]
        bands.append(band.reshape(L, Cin))

    # kw-outer / kh-inner: each kw accumulates in a traced f32 value (no VMEM
    # round-trips), is rolled by kw*dil on the XLU and folded into out_flat.
    # The flat roll is exact for retained columns since Wo + (KW-1)*dil <= Wp_pad.
    out_flat = None
    for kw in range(KW):
        acc = None
        for kh in range(KH):
            z = jnp.dot(bands[kh], w_ref[kh * KW + kw],
                        preferred_element_type=jnp.float32)
            acc = z if acc is None else acc + z
        if kw > 0:
            acc = pltpu.roll(acc, shift=L - kw * dil, axis=0)
        out_flat = acc if out_flat is None else out_flat + acc

    out = out_flat.reshape(TH, Wp_pad, Cout)[:, 0:Wo, :]
    y_ref[0] = out

    # Independent per-(n, tile) BatchNorm partial sums (reduced in the
    # wrapper); no cross-tile accumulation state in the kernel.
    sum_ref[...] = jnp.sum(out, axis=(0, 1)).reshape(1, 1, 1, Cout)
    sq_ref[...] = jnp.sum(out * out, axis=(0, 1)).reshape(1, 1, 1, Cout)


def _bn_relu_kernel(y_ref, scale_ref, shift_ref, out_ref):
    """Fused affine BatchNorm (precomputed scale/shift) + ReLU on one tile."""
    out_ref[...] = jnp.maximum(y_ref[...] * scale_ref[0] + shift_ref[0], 0.0)


def aspp_module_forward(x_nchw, weight_oihw, gamma, beta, *, padding, dilation,
                        eps=1e-5, vmem_limit_bytes=None):
    """Equivalent of _ASPPModule.forward: returns (relu(bn(y)), y) in NCHW."""
    N, Cin, H, W = x_nchw.shape
    Cout, _, KH, KW = weight_oihw.shape
    dil, pad = dilation, padding

    Hp = H + 2 * pad
    Ho = Hp - (KH - 1) * dil
    Wo = W + 2 * pad - (KW - 1) * dil
    Wp_pad = _round_up(W + 2 * pad, 8)          # sublane-aligned padded width
    assert Wo + (KW - 1) * dil <= Wp_pad        # roll-based kw shift is exact

    if vmem_limit_bytes is None:
        vmem_limit_bytes = _default_vmem_limit_bytes()

    # Row tile: biggest divisor of Ho whose per-tile working set (bf16 bands,
    # ~3 live f32 copies of the Cout-wide accumulator, double-buffered y tile)
    # fits a quarter of the VMEM budget.
    conv_row_bytes = Wp_pad * (KH * Cin * 2 + 3 * Cout * 4) + 2 * Wo * Cout * 4
    TH = _pick_row_tile(Ho, conv_row_bytes, vmem_limit_bytes // 4)
    n_ht = Ho // TH

    # Single boundary transpose + bf16 cast NCHW -> NHWC (channels on the
    # 128-lane axis, bf16 MXU operands, halved input HBM/VMEM traffic).
    x_nhwc = jnp.transpose(x_nchw, (0, 2, 3, 1)).astype(jnp.bfloat16)

    # (Cout, Cin, KH, KW) -> (KH*KW, Cin, Cout), bf16 MXU operand.
    w = jnp.transpose(weight_oihw, (2, 3, 1, 0)).reshape(KH * KW, Cin, Cout)
    w = w.astype(jnp.bfloat16)

    # TODO(synk): for real ASPP widths (Cin ~ 1024-2048, planes ~ 256) stream
    # Cin in 256-512 chunks (k grid axis / emit_pipeline) instead of keeping
    # the full padded image resident; fold the KW taps into the contraction
    # when Cin is small; pad/fuse Cout to a multiple of 128 lanes when
    # planes < 128 so conv/BN stores are unmasked vst.
    conv = pl.pallas_call(
        functools.partial(_conv_stats_kernel, H=H, W=W, Cin=Cin, Cout=Cout,
                          KH=KH, KW=KW, dil=dil, pad=pad, TH=TH, Wo=Wo,
                          Wp_pad=Wp_pad),
        out_shape=(jax.ShapeDtypeStruct((N, Ho, Wo, Cout), jnp.float32),
                   jax.ShapeDtypeStruct((N, n_ht, 1, Cout), jnp.float32),
                   jax.ShapeDtypeStruct((N, n_ht, 1, Cout), jnp.float32)),
        grid=(N, n_ht),
        in_specs=[
            # whole (unpadded) bf16 image stays resident across the row tiles
            pl.BlockSpec((1, H, W, Cin), lambda n, hi: (n, 0, 0, 0)),
            # weight resident across the whole grid (DMA'd once)
            pl.BlockSpec((KH * KW, Cin, Cout), lambda n, hi: (0, 0, 0)),
        ],
        out_specs=(
            pl.BlockSpec((1, TH, Wo, Cout), lambda n, hi: (n, hi, 0, 0)),
            pl.BlockSpec((1, 1, 1, Cout), lambda n, hi: (n, hi, 0, 0)),
            pl.BlockSpec((1, 1, 1, Cout), lambda n, hi: (n, hi, 0, 0)),
        ),
        scratch_shapes=[
            pltpu.VMEM((Hp, Wp_pad, Cin), jnp.bfloat16),
        ],
        # hi stays "arbitrary" because the padded-image scratch is built at
        # hi == 0 and reused by later row tiles of the same batch element.
        # TODO(synk): on v7x, DMA HBM->xpad via memory_space=pl.ANY per tile so
        # hi can also be marked "parallel" (megacore) when N is small, and the
        # duplicate image copy in VMEM disappears.
        compiler_params=pltpu.CompilerParams(
            dimension_semantics=("parallel", "arbitrary"),
            vmem_limit_bytes=vmem_limit_bytes),
    )
    y_nhwc, ysum_p, ysq_p = conv(x_nhwc, w)

    # Fold train-mode batch statistics + gamma/beta into one (Cout,) scale and
    # shift (tiny XLA ops) so the BN pass only streams y.
    count = float(N * Ho * Wo)
    ysum = jnp.sum(ysum_p, axis=(0, 1, 2))
    ysq = jnp.sum(ysq_p, axis=(0, 1, 2))
    mean = ysum / count
    var = ysq / count - mean * mean                       # biased (BN train mode)
    scale = gamma.astype(jnp.float32) * lax.rsqrt(var + eps)
    shift = beta.astype(jnp.float32) - mean * scale

    # BN+ReLU pass: pure HBM-bandwidth bound, so use large row-group blocks.
    bn_row_bytes = 4 * Wo * Cout * 4                      # in + out, double-buffered
    THb = _pick_row_tile(Ho, bn_row_bytes,
                         min(8 * 1024 * 1024, vmem_limit_bytes // 4))
    bn_relu = pl.pallas_call(
        _bn_relu_kernel,
        out_shape=jax.ShapeDtypeStruct((N, Ho, Wo, Cout), jnp.float32),
        grid=(N, Ho // THb),
        in_specs=[
            pl.BlockSpec((1, THb, Wo, Cout), lambda n, hb: (n, hb, 0, 0)),
            pl.BlockSpec((1, Cout), lambda n, hb: (0, 0)),
            pl.BlockSpec((1, Cout), lambda n, hb: (0, 0)),
        ],
        out_specs=pl.BlockSpec((1, THb, Wo, Cout), lambda n, hb: (n, hb, 0, 0)),
        compiler_params=pltpu.CompilerParams(
            dimension_semantics=("parallel", "parallel"),
            vmem_limit_bytes=vmem_limit_bytes),
    )
    out_nhwc = bn_relu(y_nhwc, scale.reshape(1, Cout), shift.reshape(1, Cout))

    # Back to the PyTorch NCHW convention for both returned tensors.
    relu_out = jnp.transpose(out_nhwc, (0, 3, 1, 2))
    y_out = jnp.transpose(y_nhwc, (0, 3, 1, 2))
    return relu_out, y_out


if __name__ == "__main__":
    key = jax.random.PRNGKey(0)
    kx, kw_key = jax.random.split(key)

    # Small shapes consistent with the module (x is NCHW).
    N, Cin, H, W = 2, 4, 16, 16
    Cout, K, dilation, padding = 8, 3, 2, 2     # typical ASPP branch: padding == dilation

    x = jax.random.normal(kx, (N, Cin, H, W), jnp.float32)

    # _init_weight: kaiming_normal_ on the conv weight, BN gamma=1 / beta=0.
    fan_in = Cin * K * K
    weight = jax.random.normal(kw_key, (Cout, Cin, K, K), jnp.float32) * jnp.sqrt(2.0 / fan_in)
    gamma = jnp.ones((Cout,), jnp.float32)
    beta = jnp.zeros((Cout,), jnp.float32)

    relu_out, y = aspp_module_forward(x, weight, gamma, beta,
                                      padding=padding, dilation=dilation)
    jax.block_until_ready((relu_out, y))

    # Pure-JAX reference with the same bf16-rounded operands (the kernel feeds
    # the MXU bf16 with f32 accumulation), then train-mode BN + ReLU.
    x_bf = x.astype(jnp.bfloat16).astype(jnp.float32)
    w_bf = weight.astype(jnp.bfloat16).astype(jnp.float32)
    y_ref = lax.conv_general_dilated(
        x_bf, w_bf, window_strides=(1, 1),
        padding=[(padding, padding), (padding, padding)],
        rhs_dilation=(dilation, dilation),
        dimension_numbers=("NCHW", "OIHW", "NCHW"))
    mean = jnp.mean(y_ref, axis=(0, 2, 3), keepdims=True)
    var = jnp.mean(jnp.square(y_ref - mean), axis=(0, 2, 3), keepdims=True)
    bn_ref = (y_ref - mean) * lax.rsqrt(var + 1e-5)
    bn_ref = bn_ref * gamma.reshape(1, -1, 1, 1) + beta.reshape(1, -1, 1, 1)
    relu_ref = jnp.maximum(bn_ref, 0.0)

    assert y.shape == (N, Cout, H, W) and relu_out.shape == (N, Cout, H, W)
    assert jnp.allclose(y, y_ref, atol=2e-3, rtol=2e-3), \
        float(jnp.max(jnp.abs(y - y_ref)))
    assert jnp.allclose(relu_out, relu_ref, atol=2e-3, rtol=2e-3), \
        float(jnp.max(jnp.abs(relu_out - relu_ref)))
    print("KERNEL_OK")
</pallas_src>

<mosaic_0001>
module attributes {stable_mosaic.version = 11 : i64} {
  func.func @_conv_stats_kernel(%arg0: i32, %arg1: i32, %arg2: memref<1x16x16x4xbf16, #tpu.memory_space<vmem>>, %arg3: memref<9x4x8xbf16, #tpu.memory_space<vmem>>, %arg4: memref<1x16x16x8xf32, #tpu.memory_space<vmem>>, %arg5: memref<1x1x1x8xf32, #tpu.memory_space<vmem>>, %arg6: memref<1x1x1x8xf32, #tpu.memory_space<vmem>>, %arg7: memref<20x24x4xbf16, #tpu.memory_space<vmem>>) attributes {dimension_semantics = [#tpu.dimension_semantics<parallel>, #tpu.dimension_semantics<arbitrary>], iteration_bounds = array<i64: 2, 1>, scalar_prefetch = 0 : i64, scratch_operands = 1 : i64, tpu.core_type = #tpu.core_type<tc>, window_params = [{transform_indices = @transform_0, window_bounds = array<i64: 1, 16, 16, 4>}, {pipeline_mode = #tpu.pipeline_mode<synchronous>, transform_indices = @transform_1, window_bounds = array<i64: 9, 4, 8>}, {transform_indices = @transform_2, window_bounds = array<i64: 1, 16, 16, 8>}, {transform_indices = @transform_3, window_bounds = array<i64: 1, 1, 1, 8>}, {transform_indices = @transform_4, window_bounds = array<i64: 1, 1, 1, 8>}]} {
    %c0_i32 = arith.constant 0 : i32
    %0 = arith.cmpi eq, %arg1, %c0_i32 : i32
    %1 = arith.extui %0 : i1 to i32
    %c0_i32_0 = arith.constant 0 : i32
    %2 = arith.cmpi ne, %1, %c0_i32_0 : i32
    scf.if %2 {
      %cst_48 = arith.constant 0.000000e+00 : bf16
      %66 = vector.broadcast %cst_48 : bf16 to vector<2x24x4xbf16>
      %c0_49 = arith.constant 0 : index
      %c0_50 = arith.constant 0 : index
      %c0_51 = arith.constant 0 : index
      %67 = vector.load %arg7[%c0_49, %c0_50, %c0_51] : memref<20x24x4xbf16, #tpu.memory_space<vmem>>, vector<2x24x4xbf16>
      tpu.vector_store %arg7[%c0_49, %c0_50, %c0_51], %66 {strides = array<i32>} : memref<20x24x4xbf16, #tpu.memory_space<vmem>>, vector<2x24x4xbf16>,
      %cst_52 = arith.constant 0.000000e+00 : bf16
      %68 = vector.broadcast %cst_52 : bf16 to vector<2x24x4xbf16>
      %c18 = arith.constant 18 : index
      %c0_53 = arith.constant 0 : index
      %c0_54 = arith.constant 0 : index
      %69 = vector.load %arg7[%c18, %c0_53, %c0_54] : memref<20x24x4xbf16, #tpu.memory_space<vmem>>, vector<2x24x4xbf16>
      tpu.vector_store %arg7[%c18, %c0_53, %c0_54], %68 {strides = array<i32>} : memref<20x24x4xbf16, #tpu.memory_space<vmem>>, vector<2x24x4xbf16>,
      %cst_55 = arith.constant 0.000000e+00 : bf16
      %70 = vector.broadcast %cst_55 : bf16 to vector<16x2x4xbf16>
      %c2_56 = arith.constant 2 : index
      %c0_57 = arith.constant 0 : index
      %c0_58 = arith.constant 0 : index
      %71 = vector.load %arg7[%c2_56, %c0_57, %c0_58] : memref<20x24x4xbf16, #tpu.memory_space<vmem>>, vector<16x2x4xbf16>
      tpu.vector_store %arg7[%c2_56, %c0_57, %c0_58], %70 {strides = array<i32>} : memref<20x24x4xbf16, #tpu.memory_space<vmem>>, vector<16x2x4xbf16>,
      %cst_59 = arith.constant 0.000000e+00 : bf16
      %72 = vector.broadcast %cst_59 : bf16 to vector<16x6x4xbf16>
      %c2_60 = arith.constant 2 : index
      %c18_61 = arith.constant 18 : index
      %c0_62 = arith.constant 0 : index
      %73 = vector.load %arg7[%c2_60, %c18_61, %c0_62] : memref<20x24x4xbf16, #tpu.memory_space<vmem>>, vector<16x6x4xbf16>
      tpu.vector_store %arg7[%c2_60, %c18_61, %c0_62], %72 {strides = array<i32>} : memref<20x24x4xbf16, #tpu.memory_space<vmem>>, vector<16x6x4xbf16>,
      %c0_63 = arith.constant 0 : index
      %c0_64 = arith.constant 0 : index
      %c0_65 = arith.constant 0 : index
      %c0_66 = arith.constant 0 : index
      %74 = vector.load %arg2[%c0_63, %c0_64, %c0_65, %c0_66] : memref<1x16x16x4xbf16, #tpu.memory_space<vmem>>, vector<1x16x16x4xbf16>
      %75 = vector.shape_cast %74 : vector<1x16x16x4xbf16> to vector<16x16x4xbf16>
      %c2_67 = arith.constant 2 : index
      %c2_68 = arith.constant 2 : index
      %c0_69 = arith.constant 0 : index
      %76 = vector.load %arg7[%c2_67, %c2_68, %c0_69] : memref<20x24x4xbf16, #tpu.memory_space<vmem>>, vector<16x16x4xbf16>
      tpu.vector_store %arg7[%c2_67, %c2_68, %c0_69], %75 {strides = array<i32>} : memref<20x24x4xbf16, #tpu.memory_space<vmem>>, vector<16x16x4xbf16>,
    } else {
    }
    %c16_i32 = arith.constant 16 : i32
    %3 = arith.muli %arg1, %c16_i32 : i32
    %4 = tpu.assume_multiple %3, 16 : i32
    %c0_i32_1 = arith.constant 0 : i32
    %5 = arith.addi %4, %c0_i32_1 : i32
    %6 = arith.index_cast %5 : i32 to index
    %c0 = arith.constant 0 : index
    %c0_2 = arith.constant 0 : index
    %7 = vector.load %arg7[%6, %c0, %c0_2] : memref<20x24x4xbf16, #tpu.memory_space<vmem>>, vector<16x24x4xbf16>
    %8 = vector.shape_cast %7 : vector<16x24x4xbf16> to vector<384x4xbf16>
    %c2_i32 = arith.constant 2 : i32
    %9 = arith.addi %4, %c2_i32 : i32
    %10 = arith.index_cast %9 : i32 to index
    %c0_3 = arith.constant 0 : index
    %c0_4 = arith.constant 0 : index
    %11 = vector.load %arg7[%10, %c0_3, %c0_4] : memref<20x24x4xbf16, #tpu.memory_space<vmem>>, vector<16x24x4xbf16>
    %12 = vector.shape_cast %11 : vector<16x24x4xbf16> to vector<384x4xbf16>
    %c4_i32 = arith.constant 4 : i32
    %13 = arith.addi %4, %c4_i32 : i32
    %14 = arith.index_cast %13 : i32 to index
    %c0_5 = arith.constant 0 : index
    %c0_6 = arith.constant 0 : index
    %15 = vector.load %arg7[%14, %c0_5, %c0_6] : memref<20x24x4xbf16, #tpu.memory_space<vmem>>, vector<16x24x4xbf16>
    %16 = vector.shape_cast %15 : vector<16x24x4xbf16> to vector<384x4xbf16>
    %c0_7 = arith.constant 0 : index
    %c0_8 = arith.constant 0 : index
    %c0_9 = arith.constant 0 : index
    %17 = vector.load %arg3[%c0_7, %c0_8, %c0_9] : memref<9x4x8xbf16, #tpu.memory_space<vmem>>, vector<1x4x8xbf16>
    %18 = vector.shape_cast %17 : vector<1x4x8xbf16> to vector<4x8xbf16>
    %cst = arith.constant dense<0.000000e+00> : vector<384x8xf32>
    %19 = tpu.matmul %8, %18, %cst {dimension_numbers = #tpu.dot_dimension_numbers<[1], [0], [0], [1], [0, 0, 1, 1], [], []>} : vector<384x4xbf16>, vector<4x8xbf16>, vector<384x8xf32> -> vector<384x8xf32>
    %c3 = arith.constant 3 : index
    %c0_10 = arith.constant 0 : index
    %c0_11 = arith.constant 0 : index
    %20 = vector.load %arg3[%c3, %c0_10, %c0_11] : memref<9x4x8xbf16, #tpu.memory_space<vmem>>, vector<1x4x8xbf16>
    %21 = vector.shape_cast %20 : vector<1x4x8xbf16> to vector<4x8xbf16>
    %cst_12 = arith.constant dense<0.000000e+00> : vector<384x8xf32>
    %22 = tpu.matmul %12, %21, %cst_12 {dimension_numbers = #tpu.dot_dimension_numbers<[1], [0], [0], [1], [0, 0, 1, 1], [], []>} : vector<384x4xbf16>, vector<4x8xbf16>, vector<384x8xf32> -> vector<384x8xf32>
    %23 = arith.addf %19, %22 : vector<384x8xf32>
    %c6 = arith.constant 6 : index
    %c0_13 = arith.constant 0 : index
    %c0_14 = arith.constant 0 : index
    %24 = vector.load %arg3[%c6, %c0_13, %c0_14] : memref<9x4x8xbf16, #tpu.memory_space<vmem>>, vector<1x4x8xbf16>
    %25 = vector.shape_cast %24 : vector<1x4x8xbf16> to vector<4x8xbf16>
    %cst_15 = arith.constant dense<0.000000e+00> : vector<384x8xf32>
    %26 = tpu.matmul %16, %25, %cst_15 {dimension_numbers = #tpu.dot_dimension_numbers<[1], [0], [0], [1], [0, 0, 1, 1], [], []>} : vector<384x4xbf16>, vector<4x8xbf16>, vector<384x8xf32> -> vector<384x8xf32>
    %27 = arith.addf %23, %26 : vector<384x8xf32>
    %c1 = arith.constant 1 : index
    %c0_16 = arith.constant 0 : index
    %c0_17 = arith.constant 0 : index
    %28 = vector.load %arg3[%c1, %c0_16, %c0_17] : memref<9x4x8xbf16, #tpu.memory_space<vmem>>, vector<1x4x8xbf16>
    %29 = vector.shape_cast %28 : vector<1x4x8xbf16> to vector<4x8xbf16>
    %cst_18 = arith.constant dense<0.000000e+00> : vector<384x8xf32>
    %30 = tpu.matmul %8, %29, %cst_18 {dimension_numbers = #tpu.dot_dimension_numbers<[1], [0], [0], [1], [0, 0, 1, 1], [], []>} : vector<384x4xbf16>, vector<4x8xbf16>, vector<384x8xf32> -> vector<384x8xf32>
    %c4 = arith.constant 4 : index
    %c0_19 = arith.constant 0 : index
    %c0_20 = arith.constant 0 : index
    %31 = vector.load %arg3[%c4, %c0_19, %c0_20] : memref<9x4x8xbf16, #tpu.memory_space<vmem>>, vector<1x4x8xbf16>
    %32 = vector.shape_cast %31 : vector<1x4x8xbf16> to vector<4x8xbf16>
    %cst_21 = arith.constant dense<0.000000e+00> : vector<384x8xf32>
    %33 = tpu.matmul %12, %32, %cst_21 {dimension_numbers = #tpu.dot_dimension_numbers<[1], [0], [0], [1], [0, 0, 1, 1], [], []>} : vector<384x4xbf16>, vector<4x8xbf16>, vector<384x8xf32> -> vector<384x8xf32>
    %34 = arith.addf %30, %33 : vector<384x8xf32>
    %c7 = arith.constant 7 : index
    %c0_22 = arith.constant 0 : index
    %c0_23 = arith.constant 0 : index
    %35 = vector.load %arg3[%c7, %c0_22, %c0_23] : memref<9x4x8xbf16, #tpu.memory_space<vmem>>, vector<1x4x8xbf16>
    %36 = vector.shape_cast %35 : vector<1x4x8xbf16> to vector<4x8xbf16>
    %cst_24 = arith.constant dense<0.000000e+00> : vector<384x8xf32>
    %37 = tpu.matmul %16, %36, %cst_24 {dimension_numbers = #tpu.dot_dimension_numbers<[1], [0], [0], [1], [0, 0, 1, 1], [], []>} : vector<384x4xbf16>, vector<4x8xbf16>, vector<384x8xf32> -> vector<384x8xf32>
    %38 = arith.addf %34, %37 : vector<384x8xf32>
    %c382_i32 = arith.constant 382 : i32
    %39 = tpu.dynamic_rotate %38 by %c382_i32 dim 0 : vector<384x8xf32>, i32 -> vector<384x8xf32>
    %40 = arith.addf %27, %39 : vector<384x8xf32>
    %c2 = arith.constant 2 : index
    %c0_25 = arith.constant 0 : index
    %c0_26 = arith.constant 0 : index
    %41 = vector.load %arg3[%c2, %c0_25, %c0_26] : memref<9x4x8xbf16, #tpu.memory_space<vmem>>, vector<1x4x8xbf16>
    %42 = vector.shape_cast %41 : vector<1x4x8xbf16> to vector<4x8xbf16>
    %cst_27 = arith.constant dense<0.000000e+00> : vector<384x8xf32>
    %43 = tpu.matmul %8, %42, %cst_27 {dimension_numbers = #tpu.dot_dimension_numbers<[1], [0], [0], [1], [0, 0, 1, 1], [], []>} : vector<384x4xbf16>, vector<4x8xbf16>, vector<384x8xf32> -> vector<384x8xf32>
    %c5 = arith.constant 5 : index
    %c0_28 = arith.constant 0 : index
    %c0_29 = arith.constant 0 : index
    %44 = vector.load %arg3[%c5, %c0_28, %c0_29] : memref<9x4x8xbf16, #tpu.memory_space<vmem>>, vector<1x4x8xbf16>
    %45 = vector.shape_cast %44 : vector<1x4x8xbf16> to vector<4x8xbf16>
    %cst_30 = arith.constant dense<0.000000e+00> : vector<384x8xf32>
    %46 = tpu.matmul %12, %45, %cst_30 {dimension_numbers = #tpu.dot_dimension_numbers<[1], [0], [0], [1], [0, 0, 1, 1], [], []>} : vector<384x4xbf16>, vector<4x8xbf16>, vector<384x8xf32> -> vector<384x8xf32>
    %47 = arith.addf %43, %46 : vector<384x8xf32>
    %c8 = arith.constant 8 : index
    %c0_31 = arith.constant 0 : index
    %c0_32 = arith.constant 0 : index
    %48 = vector.load %arg3[%c8, %c0_31, %c0_32] : memref<9x4x8xbf16, #tpu.memory_space<vmem>>, vector<1x4x8xbf16>
    %49 = vector.shape_cast %48 : vector<1x4x8xbf16> to vector<4x8xbf16>
    %cst_33 = arith.constant dense<0.000000e+00> : vector<384x8xf32>
    %50 = tpu.matmul %16, %49, %cst_33 {dimension_numbers = #tpu.dot_dimension_numbers<[1], [0], [0], [1], [0, 0, 1, 1], [], []>} : vector<384x4xbf16>, vector<4x8xbf16>, vector<384x8xf32> -> vector<384x8xf32>
    %51 = arith.addf %47, %50 : vector<384x8xf32>
    %c380_i32 = arith.constant 380 : i32
    %52 = tpu.dynamic_rotate %51 by %c380_i32 dim 0 : vector<384x8xf32>, i32 -> vector<384x8xf32>
    %53 = arith.addf %40, %52 : vector<384x8xf32>
    %54 = vector.shape_cast %53 : vector<384x8xf32> to vector<16x24x8xf32>
    %55 = vector.extract_strided_slice %54 {offsets = [0, 0, 0], sizes = [16, 16, 8], strides = [1, 1, 1]} : vector<16x24x8xf32> to vector<16x16x8xf32>
    %c0_34 = arith.constant 0 : index
    %c0_35 = arith.constant 0 : index
    %c0_36 = arith.constant 0 : index
    %c0_37 = arith.constant 0 : index
    %56 = vector.load %arg4[%c0_34, %c0_35, %c0_36, %c0_37] : memref<1x16x16x8xf32, #tpu.memory_space<vmem>>, vector<1x16x16x8xf32>
    %57 = vector.shape_cast %56 : vector<1x16x16x8xf32> to vector<16x16x8xf32>
    %58 = vector.shape_cast %55 : vector<16x16x8xf32> to vector<1x16x16x8xf32>
    tpu.vector_store %arg4[%c0_34, %c0_35, %c0_36, %c0_37], %58 {strides = array<i32>} : memref<1x16x16x8xf32, #tpu.memory_space<vmem>>, vector<1x16x16x8xf32>,
    %cst_38 = arith.constant dense<0.000000e+00> : vector<8xf32>
    %59 = vector.multi_reduction <add>, %55, %cst_38 [0, 1] : vector<16x16x8xf32> to vector<8xf32>
    %60 = vector.shape_cast %59 : vector<8xf32> to vector<1x1x1x8xf32>
    %c0_39 = arith.constant 0 : index
    %c0_40 = arith.constant 0 : index
    %c0_41 = arith.constant 0 : index
    %c0_42 = arith.constant 0 : index
    %61 = vector.load %arg5[%c0_39, %c0_40, %c0_41, %c0_42] : memref<1x1x1x8xf32, #tpu.memory_space<vmem>>, vector<1x1x1x8xf32>
    tpu.vector_store %arg5[%c0_39, %c0_40, %c0_41, %c0_42], %60 {strides = array<i32>} : memref<1x1x1x8xf32, #tpu.memory_space<vmem>>, vector<1x1x1x8xf32>,
    %62 = arith.mulf %55, %55 : vector<16x16x8xf32>
    %cst_43 = arith.constant dense<0.000000e+00> : vector<8xf32>
    %63 = vector.multi_reduction <add>, %62, %cst_43 [0, 1] : vector<16x16x8xf32> to vector<8xf32>
    %64 = vector.shape_cast %63 : vector<8xf32> to vector<1x1x1x8xf32>
    %c0_44 = arith.constant 0 : index
    %c0_45 = arith.constant 0 : index
    %c0_46 = arith.constant 0 : index
    %c0_47 = arith.constant 0 : index
    %65 = vector.load %arg6[%c0_44, %c0_45, %c0_46, %c0_47] : memref<1x1x1x8xf32, #tpu.memory_space<vmem>>, vector<1x1x1x8xf32>
    tpu.vector_store %arg6[%c0_44, %c0_45, %c0_46, %c0_47], %64 {strides = array<i32>} : memref<1x1x1x8xf32, #tpu.memory_space<vmem>>, vector<1x1x1x8xf32>,
    return
  }
  func.func @transform_0(%arg0: i32, %arg1: i32) -> (i32, i32, i32, i32) {
    %c0_i32 = arith.constant 0 : i32
    %c0_i32_0 = arith.constant 0 : i32
    %c0_i32_1 = arith.constant 0 : i32
    %c0_i32_2 = arith.constant 0 : i32
    return %arg0, %c0_i32, %c0_i32_0, %c0_i32_1 : i32, i32, i32, i32
  }
  func.func @transform_1(%arg0: i32, %arg1: i32) -> (i32, i32, i32) {
    %c0_i32 = arith.constant 0 : i32
    %c0_i32_0 = arith.constant 0 : i32
    %c0_i32_1 = arith.constant 0 : i32
    %c0_i32_2 = arith.constant 0 : i32
    return %c0_i32, %c0_i32_0, %c0_i32_1 : i32, i32, i32
  }
  func.func @transform_2(%arg0: i32, %arg1: i32) -> (i32, i32, i32, i32) {
    %c0_i32 = arith.constant 0 : i32
    %c0_i32_0 = arith.constant 0 : i32
    %c0_i32_1 = arith.constant 0 : i32
    return %arg0, %arg1, %c0_i32, %c0_i32_0 : i32, i32, i32, i32
  }
  func.func @transform_3(%arg0: i32, %arg1: i32) -> (i32, i32, i32, i32) {
    %c0_i32 = arith.constant 0 : i32
    %c0_i32_0 = arith.constant 0 : i32
    %c0_i32_1 = arith.constant 0 : i32
    return %arg0, %arg1, %c0_i32, %c0_i32_0 : i32, i32, i32, i32
  }
  func.func @transform_4(%arg0: i32, %arg1: i32) -> (i32, i32, i32, i32) {
    %c0_i32 = arith.constant 0 : i32
    %c0_i32_0 = arith.constant 0 : i32
    %c0_i32_1 = arith.constant 0 : i32
    return %arg0, %arg1, %c0_i32, %c0_i32_0 : i32, i32, i32, i32
  }
}

</mosaic_0001>

<bundles_post_ra>
// kernel: tpu_custom_call.1
= control target key start
LH: loop header
LB: loop body
LE: loop exit
PB: predicated region body
PF: predicated region fallthrough
CT: control target
= control target key end

     0   :  { %10 = vsyncpa [#allocation4], 0  ;;  %s7070_s0 = inlined_call_operand.vmem [shape: bf16[2,16,16,4], index: 0, kind: input, shape index: {}]   ;;  %s7071_s1 = inlined_call_operand.vmem [shape: bf16[9,4,8], index: 1, kind: input, shape index: {}]   ;;  %s7072_s2 = inlined_call_operand.vmem [shape: f32[2,16,16,8], index: 2, kind: output, shape index: {0}]   ;;  %s7073_s3 = inlined_call_operand.hbm [shape: f32[2,1,1,8], index: 3, kind: output, shape index: {1}]   ;;  %s7074_s4 = inlined_call_operand.hbm [shape: f32[2,1,1,8], index: 4, kind: output, shape index: {2}]  }
   0x1   :  { %12 = vsyncpa [#allocation4 + $0x1], 0 }
   0x2   :  { %13 = vsyncpa [#allocation6], 0 }
   0x3   :  { %15 = vsyncpa [#allocation6 + $0x1], 0  ;;  %s5610_s15 = smov 0   ;;  %s5612_s16 = smov 0  }
   0x4   :  { %s5614_s17 = smov 0   ;;  %s5616_s18 = smov 0  }
   0x5   :  { %s5618_s19 = smov 0   ;;  %s5620_s20 = smov 0  }
   0x6 LB: > { %s4051_s21 = sadd.s32 4294967295, %s5580_s20   ;;  %s4052_s22 = sadd.s32 4294967294, %s5580_s20   ;;  %s5580_s20 = sphi %s5620_s20, %s21_s20   ;;  %s5576_s19 = sphi %s5618_s19, %s7167_s19   ;;  %s5572_s18 = sphi %s5616_s18, %s7166_s18   ;;  %s5568_s17 = sphi %s5614_s17, %s7165_s17   ;;  %s5564_s16 = sphi %s5612_s16, %s7164_s16   ;;  %s5560_s15 = sphi %s5610_s15, %s7163_s15  }
   0x7   : > { %s33_s23 = sadd.s32 1, %s5576_s19  ;;  %s117_s24 = sadd.s32 1, %s5568_s17 }
   0x8   : > { %p35_p0 = scmp.ge.s32.totalorder %s33_s23, 2  ;;  %p127_p1 = scmp.ne.s32.totalorder %s5568_s17, %s5564_s16 }
   0x9   : > { %p128_p2 = scmp.eq.s32.totalorder %s4051_s21, 1  ;;  %p133_p3 = scmp.ne.s32.totalorder %s5564_s16, %s5560_s15 }
   0xa   : > { %s7169_s23 = smov (%p35_p0, %s33_s23), 0  ;;  %p134_p5 = scmp.eq.s32.totalorder %s4052_s22, 1 }
   0xb   : > { %p5650_p4 = por %p128_p2, %p127_p1  ;;  %s112_s26 = ssub.s32 %s5576_s19, %s7169_s23 }
   0xc   : > { %p4055_p6 = scmp.ge.s32.totalorder %s5580_s20, 1  ;;  %p115_p7 = scmp.eq.s32.totalorder %s112_s26, 0 }
   0xd   : > { %p5657_p8 = por %p134_p5, %p133_p3  ;;  %p191_p9 = scmp.lt.s32.totalorder %s5580_s20, 3 }
   0xe   : > { %s5663_s28 = scalar_select %p115_p7, %s5568_s17, %s117_s24  }
   0xf   : > { %p192_p10 = pnand %p4055_p6, %p191_p9 }
  0x11   : > { %195 = sbr.rel (%p192_p10) target bundleno = 766 (0x2fe), region = 28 }
  0x18   : > { %v4156_v0 = vld [vmem:[%s7071_s1 + $0x6] sm:$0x3]  ;;  %vm895_vm0 = vcmask 1041408   ;;  %p230_p11 = scmp.lt.s32.totalorder %s5572_s18, 1  ;;  %vm251_vm1 = vcmask 27648   ;;  %vm266_vm2 = vcmask 24576  }
  0x19   : > { %5328 = vmatprep.subr.msk.bf16.mxu1 %vm895_vm0, %v4156_v0  ;;  %5327 = vmatprep.subr.msk.bf16.mxu0 %vm895_vm0, %v4156_v0  ;;  %v897_v1 = vsel %vm895_vm0, %v4156_v0, 0  ;;  %vm283_vm3 = vcmask 27649   ;;  %v5582_v2 = vmov 0   ;;  %v5687_v3 = vld [vmem:[%s7071_s1] sm:$0x3]  ;;  %vm364_vm4 = vcmask 1040384  }
  0x1a   : > { %252 = vst.msk [vmem:[#allocation2] sm:$0xf] %vm251_vm1, %v5582_v2  ;;  %253 = vst.msk [vmem:[#allocation2 + $0x4] sm:$0xf] %vm251_vm1, %v5582_v2  ;;  %5134 = vmatpush3.bf16.msra.mxu1 %v897_v1  ;;  %4684 = vmatpush3.bf16.msra.mxu0 %v897_v1  ;;  %s5692_s7 = scalar_select %p230_p11, %s5572_s18, 1  ;;  %vm365_vm5 = vcmask 1044484  }
  0x1b   : > { %254 = vst.msk [vmem:[#allocation2 + $0x8] sm:$0xf] %vm251_vm1, %v5582_v2  ;;  %255 = vst.msk [vmem:[#allocation2 + $0xc] sm:$0xf] %vm251_vm1, %v5582_v2  ;;  %v4253_v4 = vld [vmem:[%s7071_s1 + $0xc] sm:$0x3]  ;;  %5329 = vmatprep.subr.msk.bf16.mxu1 %vm895_vm0, %v5687_v3 }
  0x1c   : > { %256 = vst.msk [vmem:[#allocation2 + $0x10] sm:$0xf] %vm251_vm1, %v5582_v2  ;;  %257 = vst.msk [vmem:[#allocation2 + $0x14] sm:$0xf] %vm251_vm1, %v5582_v2  ;;  %5330 = vmatprep.subr.msk.bf16.mxu0 %vm895_vm0, %v4253_v4  ;;  %s4456_s10 = sshll.u32 %s5692_s7, 7  ;;  %vm822_vm7 = vcmask 31744  }
  0x1d   : > { %259 = vst.msk [vmem:[#allocation2 + $0xd8] sm:$0xf] %vm251_vm1, %v5582_v2  ;;  %260 = vst.msk [vmem:[#allocation2 + $0xdc] sm:$0xf] %vm251_vm1, %v5582_v2  ;;  %s5736_s13 = scalar_lea.vmem %s7070_s0, %s4456_s10  ;;  %v5753_v23 = vsel %vm895_vm0, %v5687_v3, 0  ;;  %v1707_v47 = vsel %vm895_vm0, %v4253_v4, 0 }
  0x1e   : > { %261 = vst.msk [vmem:[#allocation2 + $0xe0] sm:$0xf] %vm251_vm1, %v5582_v2  ;;  %262 = vst.msk [vmem:[#allocation2 + $0xe4] sm:$0xf] %vm251_vm1, %v5582_v2  ;;  %v300_v5 = vld [vmem:[%s5736_s13] sm:$0xf] }
  0x1f   : > { %263 = vst.msk [vmem:[#allocation2 + $0xe8] sm:$0xf] %vm251_vm1, %v5582_v2  ;;  %264 = vst.msk [vmem:[#allocation2 + $0xec] sm:$0xf] %vm251_vm1, %v5582_v2  ;;  %v301_v6 = vld [vmem:[%s5736_s13 + $0x4] sm:$0xf] }
  0x20   : > { %267 = vst.msk [vmem:[#allocation2 + $0x18] sm:$0x1] %vm266_vm2, %v5582_v2  ;;  %268 = vst.msk [vmem:[#allocation2 + $0x24] sm:$0x1] %vm266_vm2, %v5582_v2  ;;  %v316_v7 = vld [vmem:[%s5736_s13 + $0x40] sm:$0xf] }
  0x21   : > { %269 = vst.msk [vmem:[#allocation2 + $0x30] sm:$0x1] %vm266_vm2, %v5582_v2  ;;  %270 = vst.msk [vmem:[#allocation2 + $0x3c] sm:$0x1] %vm266_vm2, %v5582_v2  ;;  %v367_v8 = vrot.slane %v300_v5, 7  ;;  %v369_v9 = vrot.slane %v301_v6, 7 }
  0x22   : > { %271 = vst.msk [vmem:[#allocation2 + $0x48] sm:$0x1] %vm266_vm2, %v5582_v2  ;;  %272 = vst.msk [vmem:[#allocation2 + $0x54] sm:$0x1] %vm266_vm2, %v5582_v2  ;;  %v317_v10 = vld [vmem:[%s5736_s13 + $0x44] sm:$0xf] }
  0x23   : > { %273 = vst.msk [vmem:[#allocation2 + $0x60] sm:$0x1] %vm266_vm2, %v5582_v2  ;;  %274 = vst.msk [vmem:[#allocation2 + $0x6c] sm:$0x1] %vm266_vm2, %v5582_v2  ;;  %v407_v11 = vrot.slane %v316_v7, 7  ;;  %v409_v13 = vrot.slane %v317_v10, 7 }
  0x24   : > { %275 = vst.msk [vmem:[#allocation2 + $0x78] sm:$0x1] %vm266_vm2, %v5582_v2  ;;  %276 = vst.msk [vmem:[#allocation2 + $0x84] sm:$0x1] %vm266_vm2, %v5582_v2  ;;  %v302_v14 = vld [vmem:[%s5736_s13 + $0x8] sm:$0xf] }
  0x25   : > { %277 = vst.msk [vmem:[#allocation2 + $0x90] sm:$0x1] %vm266_vm2, %v5582_v2  ;;  %278 = vst.msk [vmem:[#allocation2 + $0x9c] sm:$0x1] %vm266_vm2, %v5582_v2  ;;  %v318_v15 = vld [vmem:[%s5736_s13 + $0x48] sm:$0xf] }
  0x26   : > { %279 = vst.msk [vmem:[#allocation2 + $0xa8] sm:$0x1] %vm266_vm2, %v5582_v2  ;;  %280 = vst.msk [vmem:[#allocation2 + $0xb4] sm:$0x1] %vm266_vm2, %v5582_v2  ;;  %v368_v16 = vrot.slane %v367_v8, 4  ;;  %v408_v17 = vrot.slane %v407_v11, 4 }
  0x27   : > { %281 = vst.msk [vmem:[#allocation2 + $0xc0] sm:$0x1] %vm266_vm2, %v5582_v2  ;;  %282 = vst.msk [vmem:[#allocation2 + $0xcc] sm:$0x1] %vm266_vm2, %v5582_v2  ;;  %v371_v18 = vrot.slane %v369_v9, 4  ;;  %v372_v19 = vrot.slane %v302_v14, 7 }
  0x28   : > { %284 = vst.msk [vmem:[#allocation2 + $0x20] sm:$0xe] %vm283_vm3, %v5582_v2  ;;  %285 = vst.msk [vmem:[#allocation2 + $0x2c] sm:$0xe] %vm283_vm3, %v5582_v2  ;;  %v303_v20 = vld [vmem:[%s5736_s13 + $0xc] sm:$0xf] }
  0x29   : > { %286 = vst.msk [vmem:[#allocation2 + $0x38] sm:$0xe] %vm283_vm3, %v5582_v2  ;;  %287 = vst.msk [vmem:[#allocation2 + $0x44] sm:$0xe] %vm283_vm3, %v5582_v2  ;;  %v411_v21 = vrot.slane %v409_v13, 4  ;;  %v412_v22 = vrot.slane %v318_v15, 7 }
  0x2a   : > { %288 = vst.msk [vmem:[#allocation2 + $0x50] sm:$0xe] %vm283_vm3, %v5582_v2  ;;  %289 = vst.msk [vmem:[#allocation2 + $0x5c] sm:$0xe] %vm283_vm3, %v5582_v2  ;;  %v374_v24 = vrot.slane %v303_v20, 7  ;;  %v373_v28 = vrot.slane %v372_v19, 4 }
  0x2b   : > { %290 = vst.msk [vmem:[#allocation2 + $0x68] sm:$0xe] %vm283_vm3, %v5582_v2  ;;  %291 = vst.msk [vmem:[#allocation2 + $0x74] sm:$0xe] %vm283_vm3, %v5582_v2  ;;  %v319_v25 = vld [vmem:[%s5736_s13 + $0x4c] sm:$0xf] }
  0x2c   : > { %292 = vst.msk [vmem:[#allocation2 + $0x80] sm:$0xe] %vm283_vm3, %v5582_v2  ;;  %293 = vst.msk [vmem:[#allocation2 + $0x8c] sm:$0xe] %vm283_vm3, %v5582_v2  ;;  %v414_v29 = vrot.slane %v319_v25, 7  ;;  %v413_v32 = vrot.slane %v412_v22, 4 }
  0x2d   : > { %294 = vst.msk [vmem:[#allocation2 + $0x98] sm:$0xe] %vm283_vm3, %v5582_v2  ;;  %295 = vst.msk [vmem:[#allocation2 + $0xa4] sm:$0xe] %vm283_vm3, %v5582_v2  ;;  %v304_v30 = vld [vmem:[%s5736_s13 + $0x10] sm:$0xf] }
  0x2e   : > { %296 = vst.msk [vmem:[#allocation2 + $0xb0] sm:$0xe] %vm283_vm3, %v5582_v2  ;;  %297 = vst.msk [vmem:[#allocation2 + $0xbc] sm:$0xe] %vm283_vm3, %v5582_v2  ;;  %v305_v31 = vld [vmem:[%s5736_s13 + $0x14] sm:$0xf] }
  0x2f   : > { %298 = vst.msk [vmem:[#allocation2 + $0xc8] sm:$0xe] %vm283_vm3, %v5582_v2  ;;  %299 = vst.msk [vmem:[#allocation2 + $0xd4] sm:$0xe] %vm283_vm3, %v5582_v2  ;;  %v376_v33 = vrot.slane %v374_v24, 4  ;;  %v377_v34 = vrot.slane %v304_v30, 7 }
  0x30   : > { %vm5742_vm6 = vmor %vm364_vm4, %vm365_vm5  ;;  %495 = vst.msk [vmem:[#allocation2 + $0x18] sm:$0xe] %vm283_vm3, %v367_v8  ;;  %v379_v35 = vrot.slane %v305_v31, 7  ;;  %v320_v36 = vld [vmem:[%s5736_s13 + $0x50] sm:$0xf]  ;;  %v416_v38 = vrot.slane %v414_v29, 4 }
  0x31   : > { %519 = vst.msk [vmem:[#allocation2 + $0x78] sm:$0xe] %vm283_vm3, %v407_v11  ;;  %v370_v26 = vsel %vm5742_vm6, %v368_v16, %v369_v9  ;;  %v410_v27 = vsel %vm5742_vm6, %v408_v17, %v409_v13  ;;  %498 = vst.msk [vmem:[#allocation2 + $0x24] sm:$0xe] %vm283_vm3, %v372_v19  ;;  %v375_v37 = vsel %vm5742_vm6, %v373_v28, %v374_v24  ;;  %v321_v39 = vld [vmem:[%s5736_s13 + $0x54] sm:$0xf] }
  0x32   : > { %497 = vst.msk [vmem:[#allocation2 + $0x20] sm:$0x1] %vm266_vm2, %v371_v18  ;;  %521 = vst.msk [vmem:[#allocation2 + $0x80] sm:$0x1] %vm266_vm2, %v411_v21  ;;  %v417_v40 = vrot.slane %v320_v36, 7  ;;  %v415_v42 = vsel %vm5742_vm6, %v413_v32, %v414_v29  ;;  %v378_v43 = vrot.slane %v377_v34, 4 }
  0x33   : > { %496 = vst.msk [vmem:[#allocation2 + $0x1c] sm:$0xf] %vm251_vm1, %v370_v26  ;;  %520 = vst.msk [vmem:[#allocation2 + $0x7c] sm:$0xf] %vm251_vm1, %v410_v27  ;;  %v306_v41 = vld [vmem:[%s5736_s13 + $0x18] sm:$0xf] }
  0x34   : > { %522 = vst.msk [vmem:[#allocation2 + $0x84] sm:$0xe] %vm283_vm3, %v412_v22  ;;  %501 = vst.msk [vmem:[#allocation2 + $0x30] sm:$0xe] %vm283_vm3, %v377_v34  ;;  %v419_v44 = vrot.slane %v321_v39, 7  ;;  %v381_v45 = vrot.slane %v379_v35, 4  ;;  %v380_v52 = vsel %vm5742_vm6, %v378_v43, %v379_v35 }
  0x35   : > { %499 = vst.msk [vmem:[#allocation2 + $0x28] sm:$0xf] %vm251_vm1, %v375_v37  ;;  %v322_v46 = vld [vmem:[%s5736_s13 + $0x58] sm:$0xf]  ;;  %523 = vst.msk [vmem:[#allocation2 + $0x88] sm:$0xf] %vm251_vm1, %v415_v42 }
  0x36   : > { %500 = vst.msk [vmem:[#allocation2 + $0x2c] sm:$0x1] %vm266_vm2, %v376_v33  ;;  %524 = vst.msk [vmem:[#allocation2 + $0x8c] sm:$0x1] %vm266_vm2, %v416_v38  ;;  %v418_v48 = vrot.slane %v417_v40, 4  ;;  %v382_v49 = vrot.slane %v306_v41, 7 }
  0x37   : > { %525 = vst.msk [vmem:[#allocation2 + $0x90] sm:$0xe] %vm283_vm3, %v417_v40  ;;  %v422_v50 = vrot.slane %v322_v46, 7  ;;  %v307_v51 = vld [vmem:[%s5736_s13 + $0x1c] sm:$0xf]  ;;  %v421_v53 = vrot.slane %v419_v44, 4 }
  0x38   : > { %503 = vst.msk [vmem:[#allocation2 + $0x38] sm:$0x1] %vm266_vm2, %v381_v45  ;;  %v384_v54 = vrot.slane %v307_v51, 7  ;;  %v420_v55 = vsel %vm5742_vm6, %v418_v48, %v419_v44  ;;  %v383_v56 = vrot.slane %v382_v49, 4  ;;  %v323_v58 = vld [vmem:[%s5736_s13 + $0x5c] sm:$0xf] }
  0x39   : > { %502 = vst.msk [vmem:[#allocation2 + $0x34] sm:$0xf] %vm251_vm1, %v380_v52  ;;  %v423_v57 = vrot.slane %v422_v50, 4  ;;  %v308_v59 = vld [vmem:[%s5736_s13 + $0x20] sm:$0xf]  ;;  %v424_v0 = vrot.slane %v323_v58, 7 }
  0x3a   : > { %504 = vst.msk [vmem:[#allocation2 + $0x3c] sm:$0xe] %vm283_vm3, %v382_v49  ;;  %528 = vst.msk [vmem:[#allocation2 + $0x9c] sm:$0xe] %vm283_vm3, %v422_v50  ;;  %v5794_v60 = vld [vmem:[#allocation2 + $0x20] sm:$0xff]   ;;  %v386_v61 = vrot.slane %v384_v54, 4  ;;  %v385_v63 = vsel %vm5742_vm6, %v383_v56, %v384_v54 }
  0x3b   : > { %526 = vst.msk [vmem:[#allocation2 + $0x94] sm:$0xf] %vm251_vm1, %v420_v55  ;;  %v5798_v62 = vld [vmem:[#allocation2 + $0x18] sm:$0xff]   ;;  %505 = vst.msk [vmem:[#allocation2 + $0x40] sm:$0xf] %vm251_vm1, %v385_v63  ;;  %v387_v2 = vrot.slane %v308_v59, 7  ;;  %v425_v5 = vsel %vm5742_vm6, %v423_v57, %v424_v0 }
  0x3c   : > { %527 = vst.msk [vmem:[#allocation2 + $0x98] sm:$0x1] %vm266_vm2, %v421_v53  ;;  %v5802_v1 = vld [vmem:[#allocation2 + $0x78] sm:$0xff]   ;;  %506 = vst.msk [vmem:[#allocation2 + $0x44] sm:$0x1] %vm266_vm2, %v386_v61  ;;  %4685 = vmatprep.mubr.msk.bf16.mxu0 %vm822_vm7, %v5798_v62  ;;  %v5813_v4 = vld [vmem:[#allocation2 + $0x80] sm:$0xff]  }
  0x3d   : > { %v5809_v3 = vld [vmem:[%s7071_s1 + $0x8] sm:$0x3]  ;;  %v426_v6 = vrot.slane %v424_v0, 4  ;;  %v5820_v7 = vld [vmem:[%s7071_s1 + $0xa] sm:$0x3]  ;;  %4709 = vmatprep.mubr.msk.bf16.mxu1 %vm822_vm7, %v5802_v1  ;;  %4686 = vmatmul.mubr.msk.bf16.vlgmr.msra.gmra.mrb[0].mxu0 %vm822_vm7, %v5794_v60  ;;  %v388_v14 = vrot.slane %v387_v2, 4 }
  0x3e   : > { %v5826_v8 = vld [vmem:[#allocation2 + $0x28] sm:$0xff]   ;;  %529 = vst.msk [vmem:[#allocation2 + $0xa0] sm:$0xf] %vm251_vm1, %v425_v5  ;;  %4710 = vmatmul.mubr.msk.bf16.vlgmr.msra.gmra.mrb[0].mxu1 %vm822_vm7, %v5813_v4  ;;  %4784 = vmatpush3.bf16.msra.mxu0 %v1707_v47  ;;  %v309_v16 = vld [vmem:[%s5736_s13 + $0x24] sm:$0xf]  ;;  %s4457_s11 = sshll.u32 %s5692_s7, 8 }
  0x3f   : > { %507 = vst.msk [vmem:[#allocation2 + $0x48] sm:$0xe] %vm283_vm3, %v387_v2  ;;  %v5832_v9 = vld [vmem:[#allocation2 + $0x88] sm:$0xff]   ;;  %4734 = vmatpush3.bf16.msra.mxu1 %v5753_v23  ;;  %4689 = vmatprep.mubr.msk.bf16.mxu0 %vm822_vm7, %v5826_v8  ;;  %v324_v17 = vld [vmem:[%s5736_s13 + $0x60] sm:$0xf]  ;;  %v389_v18 = vrot.slane %v309_v16, 7 }
  0x40   : > { %530 = vst.msk [vmem:[#allocation2 + $0xa4] sm:$0x1] %vm266_vm2, %v426_v6  ;;  %4713 = vmatprep.mubr.msk.bf16.mxu1 %vm822_vm7, %v5832_v9  ;;  %v5840_v10 = vld [vmem:[#allocation2 + $0x30] sm:$0xff]   ;;  %5331 = vmatprep.subr.msk.bf16.mxu1 %vm895_vm0, %v5809_v3  ;;  %v427_v19 = vrot.slane %v324_v17, 7  ;;  %v325_v20 = vld [vmem:[%s5736_s13 + $0x64] sm:$0xf] }
  0x41   : > { %5334 = vmatprep.subr.msk.bf16.mxu0 %vm895_vm0, %v5820_v7  ;;  %v5848_v13 = vld [vmem:[#allocation2 + $0x38] sm:$0xff]   ;;  %v390_v21 = vsel %vm5742_vm6, %v388_v14, %v389_v18  ;;  %v429_v23 = vrot.slane %v325_v20, 7  ;;  %v310_v24 = vld [vmem:[%s5736_s13 + $0x28] sm:$0xf]  ;;  %v391_v25 = vrot.slane %v389_v18, 4  ;;  %vm3654_vm10 = vcmask 64512  }
  0x42   : > { %v5844_v11 = vld [vmem:[#allocation2 + $0x90] sm:$0xff]   ;;  %v428_v22 = vrot.slane %v427_v19, 4  ;;  %531 = vst.msk [vmem:[#allocation2 + $0xa8] sm:$0xe] %vm283_vm3, %v427_v19  ;;  %v392_v27 = vrot.slane %v310_v24, 7  ;;  %s6979_s14 = sand.u32 1, %s5564_s16  }
  0x43   : > { %v5850_v15 = vld [vmem:[#allocation2 + $0x98] sm:$0xff]   ;;  %v5867_v26 = vld [vmem:[#allocation2 + $0x40] sm:$0xff]   ;;  %508 = vst.msk [vmem:[#allocation2 + $0x4c] sm:$0xf] %vm251_vm1, %v390_v21  ;;  %v326_v28 = vld [vmem:[%s5736_s13 + $0x68] sm:$0xf] }
  0x44   : > { %v311_v29 = vld [vmem:[%s5736_s13 + $0x2c] sm:$0xf]  ;;  %v430_v31 = vsel %vm5742_vm6, %v428_v22, %v429_v23  ;;  %509 = vst.msk [vmem:[#allocation2 + $0x50] sm:$0x1] %vm266_vm2, %v391_v25  ;;  %v431_v32 = vrot.slane %v429_v23, 4  ;;  %v432_v33 = vrot.slane %v326_v28, 7 }
  0x45   : > { %4690 = vmatmul.mubr.msk.bf16.gmra.mrb[4].mxu0 %vm822_vm7, %v5840_v10  ;;  %v394_v34 = vrot.slane %v311_v29, 7  ;;  %v327_v35 = vld [vmem:[%s5736_s13 + $0x6c] sm:$0xf]  ;;  %532 = vst.msk [vmem:[#allocation2 + $0xac] sm:$0xf] %vm251_vm1, %v430_v31  ;;  %v393_v36 = vrot.slane %v392_v27, 4 }
  0x46   : > { %4714 = vmatmul.mubr.msk.bf16.gmra.mrb[4].mxu1 %vm822_vm7, %v5844_v11  ;;  %4693 = vmatprep.mubr.msk.bf16.mxu0 %vm822_vm7, %v5848_v13  ;;  %510 = vst.msk [vmem:[#allocation2 + $0x54] sm:$0xe] %vm283_vm3, %v392_v27  ;;  %v434_v37 = vrot.slane %v327_v35, 7  ;;  %v312_v38 = vld [vmem:[%s5736_s13 + $0x30] sm:$0xf]  ;;  %v433_v40 = vrot.slane %v432_v33, 4 }
  0x47   : > { %4717 = vmatprep.mubr.msk.bf16.mxu1 %vm822_vm7, %v5850_v15  ;;  %v5872_v30 = vld [vmem:[#allocation2 + $0xa0] sm:$0xff]   ;;  %v313_v39 = vld [vmem:[%s5736_s13 + $0x34] sm:$0xf]  ;;  %533 = vst.msk [vmem:[#allocation2 + $0xb0] sm:$0x1] %vm266_vm2, %v431_v32  ;;  %v396_v41 = vrot.slane %v394_v34, 4  ;;  %v395_v45 = vsel %vm5742_vm6, %v393_v36, %v394_v34 }
  0x48   : > { %534 = vst.msk [vmem:[#allocation2 + $0xb4] sm:$0xe] %vm283_vm3, %v432_v33  ;;  %v397_v42 = vrot.slane %v312_v38, 7  ;;  %v399_v43 = vrot.slane %v313_v39, 7  ;;  %v328_v44 = vld [vmem:[%s5736_s13 + $0x70] sm:$0xf]  ;;  %v435_v50 = vsel %vm5742_vm6, %v433_v40, %v434_v37 }
  0x49   : > { %v436_v46 = vrot.slane %v434_v37, 4  ;;  %v329_v47 = vld [vmem:[%s5736_s13 + $0x74] sm:$0xf]  ;;  %v437_v48 = vrot.slane %v328_v44, 7  ;;  %v314_v49 = vld [vmem:[%s5736_s13 + $0x38] sm:$0xf] }
  0x4a   : > { %511 = vst.msk [vmem:[#allocation2 + $0x58] sm:$0xf] %vm251_vm1, %v395_v45  ;;  %v398_v51 = vrot.slane %v397_v42, 4  ;;  %v439_v52 = vrot.slane %v329_v47, 7  ;;  %v401_v53 = vrot.slane %v399_v43, 4  ;;  %v402_v56 = vrot.slane %v314_v49, 7 }
  0x4b   : > { %512 = vst.msk [vmem:[#allocation2 + $0x5c] sm:$0x1] %vm266_vm2, %v396_v41  ;;  %v330_v54 = vld [vmem:[%s5736_s13 + $0x78] sm:$0xf]  ;;  %536 = vst.msk [vmem:[#allocation2 + $0xbc] sm:$0x1] %vm266_vm2, %v436_v46 }
  0x4c   : > { %513 = vst.msk [vmem:[#allocation2 + $0x60] sm:$0xe] %vm283_vm3, %v397_v42  ;;  %v438_v55 = vrot.slane %v437_v48, 4  ;;  %537 = vst.msk [vmem:[#allocation2 + $0xc0] sm:$0xe] %vm283_vm3, %v437_v48  ;;  %v442_v57 = vrot.slane %v330_v54, 7  ;;  %v400_v59 = vsel %vm5742_vm6, %v398_v51, %v399_v43 }
  0x4d   : > { %4694 = vmatmul.mubr.msk.bf16.gmra.mrb[8].mxu0 %vm822_vm7, %v5867_v26  ;;  %535 = vst.msk [vmem:[#allocation2 + $0xb8] sm:$0xf] %vm251_vm1, %v435_v50  ;;  %v5902_v58 = vld [vmem:[#allocation2 + $0x48] sm:$0xff]   ;;  %v441_v61 = vrot.slane %v439_v52, 4  ;;  %v315_v63 = vld [vmem:[%s5736_s13 + $0x3c] sm:$0xf] }
  0x4e   : > { %4718 = vmatmul.mubr.msk.bf16.gmra.mrb[8].mxu1 %vm822_vm7, %v5872_v30  ;;  %515 = vst.msk [vmem:[#allocation2 + $0x68] sm:$0x1] %vm266_vm2, %v401_v53  ;;  %v440_v0 = vsel %vm5742_vm6, %v438_v55, %v439_v52  ;;  %v403_v2 = vrot.slane %v402_v56, 4  ;;  %v404_v5 = vrot.slane %v315_v63, 7  ;;  %4697 = vmatprep.mubr.msk.bf16.mxu0 %vm822_vm7, %v5902_v58  ;;  %v5915_v6 = vld [vmem:[#allocation2 + $0xa8] sm:$0xff]   ;;  %v443_v14 = vrot.slane %v442_v57, 4 }
  0x4f   : > { %514 = vst.msk [vmem:[#allocation2 + $0x64] sm:$0xf] %vm251_vm1, %v400_v59  ;;  %538 = vst.msk [vmem:[#allocation2 + $0xc4] sm:$0xf] %vm251_vm1, %v440_v0  ;;  %v5919_v16 = vld [vmem:[#allocation2 + $0x50] sm:$0xff]   ;;  %4721 = vmatprep.mubr.msk.bf16.mxu1 %vm822_vm7, %v5915_v6  ;;  %v5968_v34 = vld [vmem:[#allocation2] sm:$0xff]  }
  0x50   : > { %516 = vst.msk [vmem:[#allocation2 + $0x6c] sm:$0xe] %vm283_vm3, %v402_v56  ;;  %540 = vst.msk [vmem:[#allocation2 + $0xcc] sm:$0xe] %vm283_vm3, %v442_v57  ;;  %v405_v17 = vsel %vm5742_vm6, %v403_v2, %v404_v5  ;;  %v406_v18 = vrot.slane %v404_v5, 4  ;;  %v5925_v19 = vld [vmem:[#allocation2 + $0xb0] sm:$0xff]  }
  0x51   : > { %539 = vst.msk [vmem:[#allocation2 + $0xc8] sm:$0x1] %vm266_vm2, %v441_v61  ;;  %v331_v20 = vld [vmem:[%s5736_s13 + $0x7c] sm:$0xf]  ;;  %v5962_v31 = vld [vmem:[#allocation2 + $0x30] sm:$0xff]   ;;  %v5980_v36 = vld [vmem:[#allocation2 + $0x8] sm:$0xff]   ;;  %s6668_s13 = scalar_lea.vmem %s7072_s2, %s4457_s11 }
  0x52   : > { %517 = vst.msk [vmem:[#allocation2 + $0x70] sm:$0xf] %vm251_vm1, %v405_v17  ;;  %v5929_v21 = vld [vmem:[#allocation2 + $0x58] sm:$0xff]   ;;  %v444_v22 = vrot.slane %v331_v20, 7  ;;  %v2808_v37 = vsel %vm895_vm0, %v5820_v7, 0  ;;  %v5984_v38 = vld [vmem:[#allocation2 + $0x10] sm:$0xff]  }
  0x53   : > { %518 = vst.msk [vmem:[#allocation2 + $0x74] sm:$0x1] %vm266_vm2, %v406_v18  ;;  %v5978_v35 = vld [vmem:[#allocation2 + $0x38] sm:$0xff]   ;;  %v1955_v39 = vsel %vm895_vm0, %v5809_v3, 0  ;;  %v5988_v40 = vld [vmem:[#allocation2 + $0x40] sm:$0xff]   ;;  %v6000_v41 = vld [vmem:[#allocation2 + $0x48] sm:$0xff]  }
  0x54   : > { %v5932_v23 = vld [vmem:[#allocation2 + $0xb8] sm:$0xff]   ;;  %v445_v24 = vsel %vm5742_vm6, %v443_v14, %v444_v22  ;;  %v446_v25 = vrot.slane %v444_v22, 4  ;;  %v6002_v3 = vld [vmem:[#allocation2 + $0x50] sm:$0xff]   ;;  %v6004_v42 = vld [vmem:[#allocation2 + $0x20] sm:$0xff]   ;;  %s4452_s21 = sshll.u32 %s5572_s18, 4  ;;  %s223_s22 = scalar_lea.vmem [#allocation3], %s6979_s14 }
  0x55   : > { %4698 = vmatmul.mubr.msk.bf16.gmra.mrb[12].mxu0 %vm822_vm7, %v5919_v16  ;;  %541 = vst.msk [vmem:[#allocation2 + $0xd0] sm:$0xf] %vm251_vm1, %v445_v24  ;;  %v5998_v7 = vld [vmem:[#allocation2 + $0x18] sm:$0xff]   ;;  %7119 = vst [vmem:[#allocation9_spill] sm:$0xff] %v6002_v3  ;;  %v6014_v43 = vld [vmem:[#allocation2 + $0x28] sm:$0xff]   ;;  %s3892_s24 = sshll.u32 %s223_s22, 4  ;;  %s6989_s6 = scalar_lea.hbm %s7073_s3, %s4452_s21  ;;  %s6991_s24 = int_to_ptr.vmem [resolvable:$true] %s3892_s24 }
  0x56   : > { %4722 = vmatmul.mubr.msk.bf16.gmra.mrb[12].mxu1 %vm822_vm7, %v5925_v19  ;;  %4701 = vmatprep.mubr.msk.bf16.mxu0 %vm822_vm7, %v5929_v21  ;;  %v5945_v27 = vld [vmem:[#allocation2 + $0x60] sm:$0xff]   ;;  %542 = vst.msk [vmem:[#allocation2 + $0xd4] sm:$0x1] %vm266_vm2, %v446_v25  ;;  %v6016_v44 = vld [vmem:[#allocation2 + $0x58] sm:$0xff]   ;;  %v6020_v46 = vld [vmem:[#allocation2 + $0x30] sm:$0xff]   ;;  %vm3756_vm11 = vcmask 57344   ;;  %s6997_s9 = scalar_lea.hbm %s7074_s4, %s4452_s21 }
  0x57   : > { %4725 = vmatprep.mubr.msk.bf16.mxu1 %vm822_vm7, %v5932_v23  ;;  %v5947_v28 = vld [vmem:[#allocation2 + $0xc0] sm:$0xff]   ;;  %v5949_v29 = vld [vmem:[#allocation2 + $0x68] sm:$0xff]   ;;  %7120 = vst [vmem:[#allocation10_spill] sm:$0xff] %v6016_v44  ;;  %v6030_v47 = vld [vmem:[#allocation2 + $0x38] sm:$0xff]   ;;  %s229_s26 = scalar_lea.vmem [#allocation5], %s6979_s14  ;;  %s3871_s10 = scalar_lea.sflag [#allocation4], %s6979_s14 }
  0x58   : > { %v5952_v12 = vld [vmem:[#allocation2 + $0xc8] sm:$0xff]   ;;  %v6018_v45 = vld [vmem:[#allocation2 + $0x60] sm:$0xff]   ;;  %v6058_v53 = vld [vmem:[#allocation2 + $0x78] sm:$0xff]   ;;  %s3906_s29 = sshll.u32 %s229_s26, 4  ;;  %s5470_s11 = scalar_lea.vmem %s6991_s24, 16  ;;  %s6999_s29 = int_to_ptr.vmem [resolvable:$true] %s3906_s29 }
  0x59   : > { %7121 = vst [vmem:[#allocation11_spill] sm:$0xff] %v6018_v45  ;;  %v6032_v48 = vld [vmem:[#allocation2 + $0x68] sm:$0xff]   ;;  %v6036_v50 = vld [vmem:[#allocation2 + $0x40] sm:$0xff]   ;;  %7124 = vst [vmem:[#allocation14_spill] sm:$0xff] %v6058_v53  ;;  %p5471_p12 = scmp.ne.s32.totalorder %s6991_s24, %s5470_s11  ;;  %s5583_s12 = smov [#allocation3]  }
  0x5a   : > { %v5964_v32 = vld [vmem:[#allocation2 + $0x70] sm:$0xff]   ;;  %7122 = vst [vmem:[#allocation12_spill] sm:$0xff] %v6032_v48  ;;  %v6049_v51 = vld [vmem:[%s7071_s1 + $0x2] sm:$0x3]  ;;  %v6056_v52 = vld [vmem:[%s7071_s1 + $0x4] sm:$0x3] }
  0x5b   : > { %v6034_v49 = vld [vmem:[#allocation2 + $0x70] sm:$0xff]   ;;  %v6062_v54 = vld [vmem:[#allocation2 + $0x48] sm:$0xff]   ;;  %v6064_v55 = vld [vmem:[#allocation2 + $0x80] sm:$0xff]   ;;  %p5472_p13 = pnand %p5471_p12, %p5650_p4  ;;  %s5474_s7 = sshll.u32 %s5583_s12, 4  ;;  %s5475_s7 = int_to_ptr.vmem [resolvable:$false] %s5474_s7 }
  0x5c   : > { %7123 = vst [vmem:[#allocation13_spill] sm:$0xff] %v6034_v49  ;;  %7125 = vst [vmem:[#allocation15_spill] sm:$0xff] %v6064_v55  ;;  %v6066_v56 = vld [vmem:[#allocation2 + $0x50] sm:$0xff]   ;;  %v6076_v57 = vld [vmem:[#allocation2 + $0x88] sm:$0xff]   ;;  %p5477_p1 = scmp.lt.s32.totalorder %s6991_s24, %s5475_s7 }
  0x5d   : > { %4702 = vmatmul.mubr.msk.bf16.gmra.mrb[16].mxu0 %vm822_vm7, %v5945_v27  ;;  %v5966_v33 = vld [vmem:[#allocation2 + $0xd0] sm:$0xff]   ;;  %7126 = vst [vmem:[#allocation16_spill] sm:$0xff] %v6076_v57  ;;  %v6078_v59 = vld [vmem:[#allocation2 + $0x58] sm:$0xff]   ;;  %v6082_v63 = vld [vmem:[#allocation2 + $0x60] sm:$0xff]   ;;  %p5473_p0 = pneg %p5472_p13 }
  0x5e   : > { %4726 = vmatmul.mubr.msk.bf16.gmra.mrb[16].mxu1 %vm822_vm7, %v5947_v28  ;;  %4705 = vmatprep.mubr.msk.bf16.mxu0 %vm822_vm7, %v5949_v29  ;;  %v6080_v61 = vld [vmem:[#allocation2 + $0x90] sm:$0xff]   ;;  %v6092_v0 = vld [vmem:[#allocation2 + $0x98] sm:$0xff]   ;;  %v6094_v2 = vld [vmem:[#allocation2 + $0x68] sm:$0xff]  }
  0x5f   : > { %4729 = vmatprep.mubr.msk.bf16.mxu1 %vm822_vm7, %v5952_v12  ;;  %7127 = vst [vmem:[#allocation17_spill] sm:$0xff] %v6080_v61  ;;  %7128 = vst [vmem:[#allocation18_spill] sm:$0xff] %v6092_v0  ;;  %v6096_v5 = vld [vmem:[#allocation2 + $0xa0] sm:$0xff]   ;;  %v6098_v14 = vld [vmem:[#allocation2 + $0x70] sm:$0xff]  }
  0x60   : > { %7129 = vst [vmem:[#allocation19_spill] sm:$0xff] %v6096_v5  ;;  %v6108_v17 = vld [vmem:[#allocation2 + $0xa8] sm:$0xff]   ;;  %v6110_v18 = vld [vmem:[#allocation2 + $0x78] sm:$0xff]   ;;  %v6112_v20 = vld [vmem:[#allocation2 + $0xb0] sm:$0xff]  }
  0x61   : > { %7130 = vst [vmem:[#allocation20_spill] sm:$0xff] %v6108_v17  ;;  %7131 = vst [vmem:[#allocation21_spill] sm:$0xff] %v6112_v20  ;;  %v6114_v22 = vld [vmem:[#allocation2 + $0x80] sm:$0xff]   ;;  %v6124_v24 = vld [vmem:[#allocation2 + $0xb8] sm:$0xff]  }
  0x62   : > { %7132 = vst [vmem:[#allocation22_spill] sm:$0xff] %v6124_v24  ;;  %v6126_v25 = vld [vmem:[#allocation2 + $0x88] sm:$0xff]  }
  0x65   : > { %4706 = vmatmul.mubr.msk.bf16.gmra.mrb[20].mxu0 %vm822_vm7, %v5964_v32 }
  0x66   : > { %4730 = vmatmul.mubr.msk.bf16.gmra.mrb[20].mxu1 %vm822_vm7, %v5966_v33  ;;  %4785 = vmatprep.mubr.msk.bf16.mxu0 %vm822_vm7, %v5962_v31 }
  0x67   : > { %4735 = vmatprep.mubr.msk.bf16.mxu1 %vm822_vm7, %v5968_v34 }
  0x6d   : > { %4786 = vmatmul.mubr.msk.bf16.vlgmr.msra.gmra.mrb[24].mxu0 %vm822_vm7, %v5978_v35 }
  0x6e   : > { %4736 = vmatmul.mubr.msk.bf16.vlgmr.msra.gmra.mrb[24].mxu1 %vm822_vm7, %v5980_v36  ;;  %4984 = vmatpush3.bf16.msra.mxu0 %v2808_v37  ;;  %v6128_v37 = vld [vmem:[#allocation2 + $0xc0] sm:$0xff]  }
  0x6f   : > { %4834 = vmatpush3.bf16.msra.mxu1 %v1955_v39  ;;  %4739 = vmatprep.mubr.msk.bf16.mxu1 %vm822_vm7, %v5984_v38  ;;  %7133 = vst [vmem:[#allocation23_spill] sm:$0xff] %v6128_v37  ;;  %v6130_v39 = vld [vmem:[#allocation2 + $0x90] sm:$0xff]  }
  0x70   : > { %4789 = vmatprep.mubr.msk.bf16.mxu0 %vm822_vm7, %v5988_v40  ;;  %5332 = vmatprep.subr.msk.bf16.mxu1 %vm895_vm0, %v6049_v51 }
  0x71   : > { %5335 = vmatprep.subr.msk.bf16.mxu0 %vm895_vm0, %v6056_v52 }
  0x75   : > { %4790 = vmatmul.mubr.msk.bf16.gmra.mrb[28].mxu0 %vm822_vm7, %v6000_v41 }
  0x76   : > { %4740 = vmatmul.mubr.msk.bf16.gmra.mrb[28].mxu1 %vm822_vm7, %v5998_v7  ;;  %4793 = vmatprep.mubr.msk.bf16.mxu0 %vm822_vm7, %v6002_v3 }
  0x77   : > { %4743 = vmatprep.mubr.msk.bf16.mxu1 %vm822_vm7, %v6004_v42 }
  0x7d   : > { %4794 = vmatmul.mubr.msk.bf16.gmra.mrb[32].mxu0 %vm822_vm7, %v6016_v44 }
  0x7e   : > { %4744 = vmatmul.mubr.msk.bf16.gmra.mrb[32].mxu1 %vm822_vm7, %v6014_v43  ;;  %4797 = vmatprep.mubr.msk.bf16.mxu0 %vm822_vm7, %v6018_v45 }
  0x7f   : > { %4747 = vmatprep.mubr.msk.bf16.mxu1 %vm822_vm7, %v6020_v46 }
  0x85   : > { %4798 = vmatmul.mubr.msk.bf16.gmra.mrb[36].mxu0 %vm822_vm7, %v6032_v48 }
  0x86   : > { %4748 = vmatmul.mubr.msk.bf16.gmra.mrb[36].mxu1 %vm822_vm7, %v6030_v47  ;;  %4801 = vmatprep.mubr.msk.bf16.mxu0 %vm822_vm7, %v6034_v49 }
  0x87   : > { %4751 = vmatprep.mubr.msk.bf16.mxu1 %vm822_vm7, %v6036_v50 }
  0x8d   : > { %4802 = vmatmul.mubr.msk.bf16.gmra.mrb[40].mxu0 %vm822_vm7, %v6058_v53 }
  0x8e   : > { %4752 = vmatmul.mubr.msk.bf16.gmra.mrb[40].mxu1 %vm822_vm7, %v6062_v54  ;;  %4805 = vmatprep.mubr.msk.bf16.mxu0 %vm822_vm7, %v6064_v55 }
  0x8f   : > { %4755 = vmatprep.mubr.msk.bf16.mxu1 %vm822_vm7, %v6066_v56 }
  0x95   : > { %4806 = vmatmul.mubr.msk.bf16.gmra.mrb[44].mxu0 %vm822_vm7, %v6076_v57  ;;  %v6162_v57 = vld [vmem:[#allocation2 + $0xb0] sm:$0xff]  }
  0x96   : > { %4756 = vmatmul.mubr.msk.bf16.gmra.mrb[44].mxu1 %vm822_vm7, %v6078_v59  ;;  %4809 = vmatprep.mubr.msk.bf16.mxu0 %vm822_vm7, %v6080_v61  ;;  %v6160_v61 = vld [vmem:[#allocation2 + $0xe0] sm:$0xff]  }
  0x97   : > { %4759 = vmatprep.mubr.msk.bf16.mxu1 %vm822_vm7, %v6082_v63  ;;  %7137 = vst [vmem:[#allocation27_spill] sm:$0xff] %v6160_v61 }
  0x9d   : > { %4810 = vmatmul.mubr.msk.bf16.gmra.mrb[48].mxu0 %vm822_vm7, %v6092_v0  ;;  %v6146_v0 = vld [vmem:[#allocation2 + $0xa0] sm:$0xff]  }
  0x9e   : > { %4760 = vmatmul.mubr.msk.bf16.gmra.mrb[48].mxu1 %vm822_vm7, %v6094_v2  ;;  %4813 = vmatprep.mubr.msk.bf16.mxu0 %vm822_vm7, %v6096_v5  ;;  %v6144_v5 = vld [vmem:[#allocation2 + $0xd0] sm:$0xff]  }
  0x9f   : > { %4763 = vmatprep.mubr.msk.bf16.mxu1 %vm822_vm7, %v6098_v14  ;;  %7135 = vst [vmem:[#allocation25_spill] sm:$0xff] %v6144_v5 }
  0xa5   : > { %4814 = vmatmul.mubr.msk.bf16.gmra.mrb[52].mxu0 %vm822_vm7, %v6108_v17  ;;  %v6142_v17 = vld [vmem:[#allocation2 + $0x98] sm:$0xff]  }
  0xa6   : > { %4764 = vmatmul.mubr.msk.bf16.gmra.mrb[52].mxu1 %vm822_vm7, %v6110_v18  ;;  %4817 = vmatprep.mubr.msk.bf16.mxu0 %vm822_vm7, %v6112_v20  ;;  %v6140_v20 = vld [vmem:[#allocation2 + $0xc8] sm:$0xff]  }
  0xa7   : > { %4767 = vmatprep.mubr.msk.bf16.mxu1 %vm822_vm7, %v6114_v22  ;;  %7134 = vst [vmem:[#allocation24_spill] sm:$0xff] %v6140_v20 }
  0xad   : > { %4818 = vmatmul.mubr.msk.bf16.gmra.mrb[56].mxu0 %vm822_vm7, %v6124_v24  ;;  %v6158_v24 = vld [vmem:[#allocation2 + $0xa8] sm:$0xff]  }
  0xae   : > { %4768 = vmatmul.mubr.msk.bf16.gmra.mrb[56].mxu1 %vm822_vm7, %v6126_v25  ;;  %4821 = vmatprep.mubr.msk.bf16.mxu0 %vm822_vm7, %v6128_v37  ;;  %v6156_v37 = vld [vmem:[#allocation2 + $0xd8] sm:$0xff]  }
  0xaf   : > { %4771 = vmatprep.mubr.msk.bf16.mxu1 %vm822_vm7, %v6130_v39  ;;  %7136 = vst [vmem:[#allocation26_spill] sm:$0xff] %v6156_v37 }
  0xb5   : > { %4822 = vmatmul.mubr.msk.bf16.gmra.mrb[60].mxu0 %vm822_vm7, %v6140_v20  ;;  %v6174_v20 = vld [vmem:[#allocation2 + $0xb8] sm:$0xff]  }
  0xb6   : > { %4772 = vmatmul.mubr.msk.bf16.gmra.mrb[60].mxu1 %vm822_vm7, %v6142_v17  ;;  %4825 = vmatprep.mubr.msk.bf16.mxu0 %vm822_vm7, %v6144_v5  ;;  %v6172_v5 = vld [vmem:[#allocation2 + $0xe8] sm:$0xff]  }
  0xb7   : > { %4775 = vmatprep.mubr.msk.bf16.mxu1 %vm822_vm7, %v6146_v0  ;;  %7138 = vst [vmem:[#allocation28_spill] sm:$0xff] %v6172_v5 }
  0xbd   : > { %4826 = vmatmul.mubr.msk.bf16.gmra.mrb[64].mxu0 %vm822_vm7, %v6156_v37  ;;  %v2183_v37 = vsel %vm895_vm0, %v6049_v51, 0 }
  0xbe   : > { %4776 = vmatmul.mubr.msk.bf16.gmra.mrb[64].mxu1 %vm822_vm7, %v6158_v24  ;;  %4829 = vmatprep.mubr.msk.bf16.mxu0 %vm822_vm7, %v6160_v61  ;;  %v3036_v61 = vsel %vm895_vm0, %v6056_v52, 0 }
  0xbf   : > { %4779 = vmatprep.mubr.msk.bf16.mxu1 %vm822_vm7, %v6162_v57 }
  0xc5   : > { %4830 = vmatmul.mubr.msk.bf16.gmra.mrb[68].mxu0 %vm822_vm7, %v6172_v5  ;;  %v6193_v5 = vld [vmem:[%s7071_s1 + $0xe] sm:$0x3] }
  0xc6   : > { %4780 = vmatmul.mubr.msk.bf16.gmra.mrb[68].mxu1 %vm822_vm7, %v6174_v20  ;;  %4985 = vmatprep.mubr.msk.bf16.mxu0 %vm822_vm7, %v5798_v62 }
  0xc7   : > { %4835 = vmatprep.mubr.msk.bf16.mxu1 %vm822_vm7, %v5798_v62  ;;  %v6200_v62 = vld [vmem:[%s7071_s1 + $0x10] sm:$0x3] }
  0xcd   : > { %4986 = vmatmul.mubr.msk.bf16.vlgmr.msra.gmra.mrb[72].mxu0 %vm822_vm7, %v5794_v60 }
  0xce   : > { %4836 = vmatmul.mubr.msk.bf16.vlgmr.msra.gmra.mrb[72].mxu1 %vm822_vm7, %v5794_v60  ;;  %5034 = vmatpush3.bf16.msra.mxu0 %v3036_v61 }
  0xcf   : > { %4884 = vmatpush3.bf16.msra.mxu1 %v2183_v37  ;;  %4839 = vmatprep.mubr.msk.bf16.mxu1 %vm822_vm7, %v5826_v8 }
  0xd0   : > { %4989 = vmatprep.mubr.msk.bf16.mxu0 %vm822_vm7, %v5826_v8  ;;  %5333 = vmatprep.subr.msk.bf16.mxu1 %vm895_vm0, %v6193_v5 }
  0xd1   : > { %5336 = vmatprep.subr.msk.bf16.mxu0 %vm895_vm0, %v6200_v62 }
  0xd5   : > { %4990 = vmatmul.mubr.msk.bf16.gmra.mrb[76].mxu0 %vm822_vm7, %v5840_v10 }
  0xd6   : > { %4840 = vmatmul.mubr.msk.bf16.gmra.mrb[76].mxu1 %vm822_vm7, %v5840_v10  ;;  %4993 = vmatprep.mubr.msk.bf16.mxu0 %vm822_vm7, %v5848_v13 }
  0xd7   : > { %4843 = vmatprep.mubr.msk.bf16.mxu1 %vm822_vm7, %v5848_v13 }
  0xdd   : > { %4994 = vmatmul.mubr.msk.bf16.gmra.mrb[80].mxu0 %vm822_vm7, %v5867_v26 }
  0xde   : > { %4844 = vmatmul.mubr.msk.bf16.gmra.mrb[80].mxu1 %vm822_vm7, %v5867_v26  ;;  %4997 = vmatprep.mubr.msk.bf16.mxu0 %vm822_vm7, %v5902_v58 }
  0xdf   : > { %4847 = vmatprep.mubr.msk.bf16.mxu1 %vm822_vm7, %v5902_v58 }
  0xe5   : > { %4998 = vmatmul.mubr.msk.bf16.gmra.mrb[84].mxu0 %vm822_vm7, %v5919_v16 }
  0xe6   : > { %4848 = vmatmul.mubr.msk.bf16.gmra.mrb[84].mxu1 %vm822_vm7, %v5919_v16  ;;  %5001 = vmatprep.mubr.msk.bf16.mxu0 %vm822_vm7, %v5929_v21 }
  0xe7   : > { %4851 = vmatprep.mubr.msk.bf16.mxu1 %vm822_vm7, %v5929_v21 }
  0xed   : > { %5002 = vmatmul.mubr.msk.bf16.gmra.mrb[88].mxu0 %vm822_vm7, %v5945_v27 }
  0xee   : > { %4852 = vmatmul.mubr.msk.bf16.gmra.mrb[88].mxu1 %vm822_vm7, %v5945_v27  ;;  %5005 = vmatprep.mubr.msk.bf16.mxu0 %vm822_vm7, %v5949_v29 }
  0xef   : > { %4855 = vmatprep.mubr.msk.bf16.mxu1 %vm822_vm7, %v5949_v29 }
  0xf5   : > { %5006 = vmatmul.mubr.msk.bf16.gmra.mrb[92].mxu0 %vm822_vm7, %v5964_v32 }
  0xf6   : > { %4856 = vmatmul.mubr.msk.bf16.gmra.mrb[92].mxu1 %vm822_vm7, %v5964_v32  ;;  %5009 = vmatprep.mubr.msk.bf16.mxu0 %vm822_vm7, %v5802_v1 }
  0xf7   : > { %4859 = vmatprep.mubr.msk.bf16.mxu1 %vm822_vm7, %v5802_v1 }
  0xfd   : > { %5010 = vmatmul.mubr.msk.bf16.gmra.mrb[96].mxu0 %vm822_vm7, %v5813_v4 }
  0xfe   : > { %4860 = vmatmul.mubr.msk.bf16.gmra.mrb[96].mxu1 %vm822_vm7, %v5813_v4  ;;  %5013 = vmatprep.mubr.msk.bf16.mxu0 %vm822_vm7, %v5832_v9 }
  0xff   : > { %4863 = vmatprep.mubr.msk.bf16.mxu1 %vm822_vm7, %v5832_v9 }
 0x105   : > { %5014 = vmatmul.mubr.msk.bf16.gmra.mrb[100].mxu0 %vm822_vm7, %v5844_v11 }
 0x106   : > { %4864 = vmatmul.mubr.msk.bf16.gmra.mrb[100].mxu1 %vm822_vm7, %v5844_v11  ;;  %5017 = vmatprep.mubr.msk.bf16.mxu0 %vm822_vm7, %v5850_v15 }
 0x107   : > { %4867 = vmatprep.mubr.msk.bf16.mxu1 %vm822_vm7, %v5850_v15 }
 0x10d   : > { %5018 = vmatmul.mubr.msk.bf16.gmra.mrb[104].mxu0 %vm822_vm7, %v5872_v30 }
 0x10e   : > { %4868 = vmatmul.mubr.msk.bf16.gmra.mrb[104].mxu1 %vm822_vm7, %v5872_v30  ;;  %5021 = vmatprep.mubr.msk.bf16.mxu0 %vm822_vm7, %v5915_v6 }
 0x10f   : > { %4871 = vmatprep.mubr.msk.bf16.mxu1 %vm822_vm7, %v5915_v6 }
 0x110   : > { %v4687_v60 = vpop.f32.mrb[0].mxu0 }
 0x111   : > { %v4711_v1 = vpop.f32.mrb[0].mxu1  ;;  %v6274_v4 = vpop.f32.mrb[1].mxu0 }
 0x112   : > { %v6276_v8 = vpop.f32.mrb[1].mxu1  ;;  %v6278_v9 = vpop.f32.mrb[2].mxu0 }
 0x113   : > { %v6280_v10 = vpop.f32.mrb[2].mxu1  ;;  %v6282_v11 = vpop.f32.mrb[3].mxu0 }
 0x114   : > { %v6284_v13 = vpop.f32.mrb[3].mxu1 }
 0x115   : > { %5022 = vmatmul.mubr.msk.bf16.gmra.mrb[108].mxu0 %vm822_vm7, %v5925_v19 }
 0x116   : > { %4872 = vmatmul.mubr.msk.bf16.gmra.mrb[108].mxu1 %vm822_vm7, %v5925_v19  ;;  %5025 = vmatprep.mubr.msk.bf16.mxu0 %vm822_vm7, %v5932_v23 }
 0x117   : > { %4875 = vmatprep.mubr.msk.bf16.mxu1 %vm822_vm7, %v5932_v23 }
 0x118   : > { %v6294_v15 = vpop.f32.mrb[4].mxu0 }
 0x119   : > { %v6296_v26 = vpop.f32.mrb[4].mxu1  ;;  %v6298_v30 = vpop.f32.mrb[5].mxu0 }
 0x11a   : > { %v6300_v58 = vpop.f32.mrb[5].mxu1  ;;  %v6302_v6 = vpop.f32.mrb[6].mxu0 }
 0x11b   : > { %v6304_v16 = vpop.f32.mrb[6].mxu1  ;;  %v951_v21 = vpop.f32.mrb[7].mxu0 }
 0x11c   : > { %v1039_v19 = vpop.f32.mrb[7].mxu1 }
 0x11d   : > { %5026 = vmatmul.mubr.msk.bf16.gmra.mrb[112].mxu0 %vm822_vm7, %v5947_v28 }
 0x11e   : > { %4876 = vmatmul.mubr.msk.bf16.gmra.mrb[112].mxu1 %vm822_vm7, %v5947_v28  ;;  %5029 = vmatprep.mubr.msk.bf16.mxu0 %vm822_vm7, %v5952_v12 }
 0x11f   : > { %4879 = vmatprep.mubr.msk.bf16.mxu1 %vm822_vm7, %v5952_v12 }
 0x120   : > { %v6314_v23 = vpop.f32.mrb[8].mxu0 }
 0x121   : > { %v6316_v27 = vpop.f32.mrb[8].mxu1  ;;  %v963_v29 = vpop.f32.mrb[9].mxu0 }
 0x122   : > { %v1051_v32 = vpop.f32.mrb[9].mxu1  ;;  %v4696_v51 = vpop.f32.mrb[10].mxu0 }
 0x123   : > { %v4720_v52 = vpop.f32.mrb[10].mxu1  ;;  %v6318_v61 = vpop.f32.mrb[11].mxu0 }
 0x124   : > { %v6320_v37 = vpop.f32.mrb[11].mxu1 }
 0x125   : > { %5030 = vmatmul.mubr.msk.bf16.gmra.mrb[116].mxu0 %vm822_vm7, %v5966_v33 }
 0x126   : > { %4880 = vmatmul.mubr.msk.bf16.gmra.mrb[116].mxu1 %vm822_vm7, %v5966_v33  ;;  %5035 = vmatprep.mubr.msk.bf16.mxu0 %vm822_vm7, %v5968_v34  ;;  %v3266_v33 = vsel %vm895_vm0, %v6200_v62, 0 }
 0x127   : > { %4885 = vmatprep.mubr.msk.bf16.mxu1 %vm822_vm7, %v5968_v34  ;;  %v2413_v34 = vsel %vm895_vm0, %v6193_v5, 0 }
 0x128   : > { %v4699_v28 = vpop.f32.mrb[12].mxu0 }
 0x129   : > { %v4723_v12 = vpop.f32.mrb[12].mxu1  ;;  %v6330_v60 = vpop.f32.mrb[13].mxu0 }
 0x12a   : > { %v6332_v1 = vpop.f32.mrb[13].mxu1  ;;  %v6334_v21 = vpop.f32.mrb[14].mxu0 }
 0x12b   : > { %v6336_v19 = vpop.f32.mrb[14].mxu1  ;;  %v6338_v29 = vpop.f32.mrb[15].mxu0 }
 0x12c   : > { %v6342_v32 = vpop.f32.mrb[15].mxu1 }
 0x12d   : > { %5036 = vmatmul.mubr.msk.bf16.vlgmr.msra.gmra.mrb[72].mxu0 %vm822_vm7, %v5980_v36 }
 0x12e   : > { %4886 = vmatmul.mubr.msk.bf16.vlgmr.msra.gmra.mrb[72].mxu1 %vm822_vm7, %v5980_v36  ;;  %5084 = vmatpush3.bf16.msra.mxu0 %v3266_v33 }
 0x12f   : > { %4934 = vmatpush3.bf16.msra.mxu1 %v2413_v34  ;;  %4889 = vmatprep.mubr.msk.bf16.mxu1 %vm822_vm7, %v5984_v38 }
 0x130   : > { %v6352_v51 = vpop.f32.mrb[16].mxu0  ;;  %5039 = vmatprep.mubr.msk.bf16.mxu0 %vm822_vm7, %v5984_v38 }
 0x131   : > { %v6356_v62 = vpop.f32.mrb[16].mxu1  ;;  %v6358_v52 = vpop.f32.mrb[17].mxu0 }
 0x132   : > { %v6360_v5 = vpop.f32.mrb[17].mxu1  ;;  %v6362_v28 = vpop.f32.mrb[18].mxu0 }
 0x133   : > { %v6364_v12 = vpop.f32.mrb[18].mxu1  ;;  %v995_v36 = vpop.f32.mrb[19].mxu0 }
 0x134   : > { %v1083_v33 = vpop.f32.mrb[19].mxu1 }
 0x135   : > { %5040 = vmatmul.mubr.msk.bf16.gmra.mrb[76].mxu0 %vm822_vm7, %v5998_v7 }
 0x136   : > { %4890 = vmatmul.mubr.msk.bf16.gmra.mrb[76].mxu1 %vm822_vm7, %v5998_v7  ;;  %5043 = vmatprep.mubr.msk.bf16.mxu0 %vm822_vm7, %v6004_v42 }
 0x137   : > { %4893 = vmatprep.mubr.msk.bf16.mxu1 %vm822_vm7, %v6004_v42 }
 0x138   : > { %v6374_v38 = vpop.f32.mrb[20].mxu0 }
 0x139   : > { %v6376_v34 = vpop.f32.mrb[20].mxu1  ;;  %v1007_v55 = vpop.f32.mrb[21].mxu0 }
 0x13a   : > { %7139 = vst [vmem:[#allocation29_spill] sm:$0xff] %v6376_v34  ;;  %v1095_v53 = vpop.f32.mrb[21].mxu1  ;;  %v4708_v36 = vpop.f32.mrb[22].mxu0 }
 0x13b   : > { %v4732_v33 = vpop.f32.mrb[22].mxu1  ;;  %v6378_v49 = vpop.f32.mrb[23].mxu0 }
 0x13c   : > { %v6380_v48 = vpop.f32.mrb[23].mxu1 }
 0x13d   : > { %7140 = vst [vmem:[#allocation30_spill] sm:$0xff] %v6380_v48  ;;  %5044 = vmatmul.mubr.msk.bf16.gmra.mrb[80].mxu0 %vm822_vm7, %v6014_v43 }
 0x13e   : > { %4894 = vmatmul.mubr.msk.bf16.gmra.mrb[80].mxu1 %vm822_vm7, %v6014_v43  ;;  %5047 = vmatprep.mubr.msk.bf16.mxu0 %vm822_vm7, %v6020_v46 }
 0x13f   : > { %4897 = vmatprep.mubr.msk.bf16.mxu1 %vm822_vm7, %v6020_v46 }
 0x140   : > { %v4787_v7 = vpop.f32.mrb[24].mxu0 }
 0x141   : > { %v4737_v42 = vpop.f32.mrb[24].mxu1  ;;  %v1743_v53 = vpop.f32.mrb[25].mxu0 }
 0x142   : > { %v1337_v55 = vpop.f32.mrb[25].mxu1  ;;  %v4788_v36 = vpop.f32.mrb[26].mxu0 }
 0x143   : > { %v1338_v33 = vadd.f32 %v1337_v55, %v6274_v4  ;;  %v4738_v45 = vpop.f32.mrb[26].mxu1  ;;  %v1746_v44 = vpop.f32.mrb[27].mxu0 }
 0x144   : > { %v1348_v48 = vadd.f32 %v4738_v45, %v6278_v9  ;;  %v1340_v34 = vpop.f32.mrb[27].mxu1 }
 0x145   : > { %v6392_v3 = vadd.f32 %v1743_v53, %v1338_v33  ;;  %v1341_v43 = vadd.f32 %v1340_v34, %v6282_v11  ;;  %5048 = vmatmul.mubr.msk.bf16.gmra.mrb[84].mxu0 %vm822_vm7, %v6030_v47 }
 0x146   : > { %v6397_v46 = vadd.f32 %v4788_v36, %v1348_v48  ;;  %4898 = vmatmul.mubr.msk.bf16.gmra.mrb[84].mxu1 %vm822_vm7, %v6030_v47  ;;  %5051 = vmatprep.mubr.msk.bf16.mxu0 %vm822_vm7, %v6036_v50 }
 0x147   : > { %v6403_v4 = vadd.f32 %v1746_v44, %v1341_v43  ;;  %4901 = vmatprep.mubr.msk.bf16.mxu1 %vm822_vm7, %v6036_v50 }
 0x148   : > { %v4791_v45 = vpop.f32.mrb[28].mxu0 }
 0x149   : > { %v4741_v9 = vpop.f32.mrb[28].mxu1  ;;  %v1758_v7 = vpop.f32.mrb[29].mxu0 }
 0x14a   : > { %v1360_v11 = vadd.f32 %v4741_v9, %v6294_v15  ;;  %v1352_v34 = vpop.f32.mrb[29].mxu1  ;;  %v4792_v42 = vpop.f32.mrb[30].mxu0 }
 0x14b   : > { %v1353_v48 = vadd.f32 %v1352_v34, %v6298_v30  ;;  %v4742_v53 = vpop.f32.mrb[30].mxu1  ;;  %v1761_v55 = vpop.f32.mrb[31].mxu0 }
 0x14c   : > { %v6409_v47 = vadd.f32 %v4791_v45, %v1360_v11  ;;  %v1363_v36 = vadd.f32 %v4742_v53, %v6302_v6  ;;  %v1355_v44 = vpop.f32.mrb[31].mxu1 }
 0x14d   : > { %v6412_v33 = vadd.f32 %v1758_v7, %v1353_v48  ;;  %5052 = vmatmul.mubr.msk.bf16.gmra.mrb[88].mxu0 %vm822_vm7, %v6062_v54 }
 0x14e   : > { %v6416_v50 = vadd.f32 %v4792_v42, %v1363_v36  ;;  %4902 = vmatmul.mubr.msk.bf16.gmra.mrb[88].mxu1 %vm822_vm7, %v6062_v54  ;;  %5055 = vmatprep.mubr.msk.bf16.mxu0 %vm822_vm7, %v6066_v56 }
 0x14f   : > { %4905 = vmatprep.mubr.msk.bf16.mxu1 %vm822_vm7, %v6066_v56 }
 0x150   : > { %v4795_v15 = vpop.f32.mrb[32].mxu0 }
 0x151   : > { %v4745_v30 = vpop.f32.mrb[32].mxu1  ;;  %v1773_v6 = vpop.f32.mrb[33].mxu0 }
 0x152   : > { %v1375_v43 = vadd.f32 %v4745_v30, %v6314_v23  ;;  %v1367_v45 = vpop.f32.mrb[33].mxu1  ;;  %v4796_v9 = vpop.f32.mrb[34].mxu0 }
 0x153   : > { %v4746_v7 = vpop.f32.mrb[34].mxu1  ;;  %v1775_v11 = vpop.f32.mrb[35].mxu0 }
 0x154   : > { %v6425_v34 = vadd.f32 %v4795_v15, %v1375_v43  ;;  %v1369_v42 = vpop.f32.mrb[35].mxu1 }
 0x155   : > { %v1370_v54 = vadd.f32 %v1369_v42, %v6318_v61  ;;  %5056 = vmatmul.mubr.msk.bf16.gmra.mrb[92].mxu0 %vm822_vm7, %v6078_v59 }
 0x156   : > { %4906 = vmatmul.mubr.msk.bf16.gmra.mrb[92].mxu1 %vm822_vm7, %v6078_v59  ;;  %5059 = vmatprep.mubr.msk.bf16.mxu0 %vm822_vm7, %v6082_v63 }
 0x157   : > { %v6434_v56 = vadd.f32 %v1775_v11, %v1370_v54  ;;  %4909 = vmatprep.mubr.msk.bf16.mxu1 %vm822_vm7, %v6082_v63 }
 0x158   : > { %v4799_v23 = vpop.f32.mrb[36].mxu0 }
 0x159   : > { %v4749_v48 = vpop.f32.mrb[36].mxu1  ;;  %v1787_v53 = vpop.f32.mrb[37].mxu0 }
 0x15a   : > { %v1381_v55 = vpop.f32.mrb[37].mxu1  ;;  %v4800_v36 = vpop.f32.mrb[38].mxu0 }
 0x15b   : > { %v1382_v61 = vadd.f32 %v1381_v55, %v6330_v60  ;;  %v4750_v44 = vpop.f32.mrb[38].mxu1  ;;  %v1790_v15 = vpop.f32.mrb[39].mxu0 }
 0x15c   : > { %v1392_v30 = vadd.f32 %v4750_v44, %v6334_v21  ;;  %v1384_v59 = vpop.f32.mrb[39].mxu1 }
 0x15d   : > { %v6440_v6 = vadd.f32 %v1787_v53, %v1382_v61  ;;  %v1385_v43 = vadd.f32 %v1384_v59, %v6338_v29  ;;  %5060 = vmatmul.mubr.msk.bf16.gmra.mrb[96].mxu0 %vm822_vm7, %v6094_v2 }
 0x15e   : > { %v6445_v63 = vadd.f32 %v4800_v36, %v1392_v30  ;;  %4910 = vmatmul.mubr.msk.bf16.gmra.mrb[96].mxu1 %vm822_vm7, %v6094_v2  ;;  %5063 = vmatprep.mubr.msk.bf16.mxu0 %vm822_vm7, %v6098_v14 }
 0x15f   : > { %v6451_v60 = vadd.f32 %v1790_v15, %v1385_v43  ;;  %4913 = vmatprep.mubr.msk.bf16.mxu1 %vm822_vm7, %v6098_v14 }
 0x160   : > { %v4803_v21 = vpop.f32.mrb[40].mxu0 }
 0x161   : > { %v4753_v45 = vpop.f32.mrb[40].mxu1  ;;  %v1802_v9 = vpop.f32.mrb[41].mxu0 }
 0x162   : > { %v1404_v29 = vadd.f32 %v4753_v45, %v6352_v51  ;;  %v1396_v7 = vpop.f32.mrb[41].mxu1  ;;  %v4804_v11 = vpop.f32.mrb[42].mxu0 }
 0x163   : > { %v1397_v42 = vadd.f32 %v1396_v7, %v6358_v52  ;;  %v4754_v54 = vpop.f32.mrb[42].mxu1  ;;  %v1805_v23 = vpop.f32.mrb[43].mxu0 }
 0x164   : > { %v6457_v2 = vadd.f32 %v4803_v21, %v1404_v29  ;;  %v1407_v48 = vadd.f32 %v4754_v54, %v6362_v28  ;;  %v1399_v53 = vpop.f32.mrb[43].mxu1 }
 0x165   : > { %v6460_v55 = vadd.f32 %v1802_v9, %v1397_v42  ;;  %5064 = vmatmul.mubr.msk.bf16.gmra.mrb[100].mxu0 %vm822_vm7, %v6110_v18 }
 0x166   : > { %v6464_v14 = vadd.f32 %v4804_v11, %v1407_v48  ;;  %4914 = vmatmul.mubr.msk.bf16.gmra.mrb[100].mxu1 %vm822_vm7, %v6110_v18  ;;  %5067 = vmatprep.mubr.msk.bf16.mxu0 %vm822_vm7, %v6114_v22 }
 0x167   : > { %4917 = vmatprep.mubr.msk.bf16.mxu1 %vm822_vm7, %v6114_v22 }
 0x168   : > { %v4807_v51 = vpop.f32.mrb[44].mxu0 }
 0x169   : > { %v4757_v52 = vpop.f32.mrb[44].mxu1  ;;  %v1817_v28 = vpop.f32.mrb[45].mxu0 }
 0x16a   : > { %v1419_v36 = vadd.f32 %v4757_v52, %v6374_v38  ;;  %v1411_v61 = vpop.f32.mrb[45].mxu1  ;;  %v4808_v44 = vpop.f32.mrb[46].mxu0 }
 0x16b   : > { %v4758_v15 = vpop.f32.mrb[46].mxu1  ;;  %v1819_v30 = vpop.f32.mrb[47].mxu0 }
 0x16c   : > { %v6473_v59 = vadd.f32 %v4807_v51, %v1419_v36  ;;  %v1413_v43 = vpop.f32.mrb[47].mxu1 }
 0x16d   : > { %v1414_v18 = vadd.f32 %v1413_v43, %v6378_v49  ;;  %5068 = vmatmul.mubr.msk.bf16.gmra.mrb[104].mxu0 %vm822_vm7, %v6126_v25 }
 0x16e   : > { %4918 = vmatmul.mubr.msk.bf16.gmra.mrb[104].mxu1 %vm822_vm7, %v6126_v25  ;;  %5071 = vmatprep.mubr.msk.bf16.mxu0 %vm822_vm7, %v6130_v39 }
 0x16f   : > { %v6482_v22 = vadd.f32 %v1819_v30, %v1414_v18  ;;  %4921 = vmatprep.mubr.msk.bf16.mxu1 %vm822_vm7, %v6130_v39 }
 0x170   : > { %v4811_v38 = vpop.f32.mrb[48].mxu0 }
 0x171   : > { %v4761_v21 = vpop.f32.mrb[48].mxu1  ;;  %v1831_v45 = vpop.f32.mrb[49].mxu0 }
 0x172   : > { %v1425_v9 = vpop.f32.mrb[49].mxu1  ;;  %v4812_v29 = vpop.f32.mrb[50].mxu0 }
 0x173   : > { %v1426_v49 = vadd.f32 %v1425_v9, %v6276_v8  ;;  %v4762_v7 = vpop.f32.mrb[50].mxu1  ;;  %v1834_v11 = vpop.f32.mrb[51].mxu0 }
 0x174   : > { %v1436_v42 = vadd.f32 %v4762_v7, %v6280_v10  ;;  %v1428_v25 = vpop.f32.mrb[51].mxu1 }
 0x175   : > { %v6488_v54 = vadd.f32 %v1831_v45, %v1426_v49  ;;  %v1429_v23 = vadd.f32 %v1428_v25, %v6284_v13  ;;  %5072 = vmatmul.mubr.msk.bf16.gmra.mrb[108].mxu0 %vm822_vm7, %v6142_v17 }
 0x176   : > { %v6493_v39 = vadd.f32 %v4812_v29, %v1436_v42  ;;  %4922 = vmatmul.mubr.msk.bf16.gmra.mrb[108].mxu1 %vm822_vm7, %v6142_v17  ;;  %5075 = vmatprep.mubr.msk.bf16.mxu0 %vm822_vm7, %v6146_v0 }
 0x177   : > { %v6499_v8 = vadd.f32 %v1834_v11, %v1429_v23  ;;  %4925 = vmatprep.mubr.msk.bf16.mxu1 %vm822_vm7, %v6146_v0 }
 0x178   : > { %v4815_v10 = vpop.f32.mrb[52].mxu0 }
 0x179   : > { %v4765_v48 = vpop.f32.mrb[52].mxu1  ;;  %v1846_v53 = vpop.f32.mrb[53].mxu0 }
 0x17a   : > { %v1448_v13 = vadd.f32 %v4765_v48, %v6296_v26  ;;  %v1440_v51 = vpop.f32.mrb[53].mxu1  ;;  %v4816_v52 = vpop.f32.mrb[54].mxu0 }
 0x17b   : > { %v1441_v28 = vadd.f32 %v1440_v51, %v6300_v58  ;;  %v4766_v36 = vpop.f32.mrb[54].mxu1  ;;  %v1849_v61 = vpop.f32.mrb[55].mxu0 }
 0x17c   : > { %v6505_v17 = vadd.f32 %v4815_v10, %v1448_v13  ;;  %v1451_v44 = vadd.f32 %v4766_v36, %v6304_v16  ;;  %v1443_v15 = vpop.f32.mrb[55].mxu1 }
 0x17d   : > { %v6508_v30 = vadd.f32 %v1846_v53, %v1441_v28  ;;  %5076 = vmatmul.mubr.msk.bf16.gmra.mrb[112].mxu0 %vm822_vm7, %v6158_v24 }
 0x17e   : > { %v6512_v0 = vadd.f32 %v4816_v52, %v1451_v44  ;;  %4926 = vmatmul.mubr.msk.bf16.gmra.mrb[112].mxu1 %vm822_vm7, %v6158_v24  ;;  %5079 = vmatprep.mubr.msk.bf16.mxu0 %vm822_vm7, %v6162_v57 }
 0x17f   : > { %4929 = vmatprep.mubr.msk.bf16.mxu1 %vm822_vm7, %v6162_v57 }
 0x180   : > { %v4819_v26 = vpop.f32.mrb[56].mxu0 }
 0x181   : > { %v4769_v58 = vpop.f32.mrb[56].mxu1  ;;  %v1861_v16 = vpop.f32.mrb[57].mxu0 }
 0x182   : > { %v1463_v43 = vadd.f32 %v4769_v58, %v6316_v27  ;;  %v1455_v18 = vpop.f32.mrb[57].mxu1  ;;  %v4820_v38 = vpop.f32.mrb[58].mxu0 }
 0x183   : > { %v4770_v21 = vpop.f32.mrb[58].mxu1  ;;  %v1863_v45 = vpop.f32.mrb[59].mxu0 }
 0x184   : > { %v6521_v9 = vadd.f32 %v4819_v26, %v1463_v43  ;;  %v1457_v29 = vpop.f32.mrb[59].mxu1  ;;  %v7142_v43 = vld [vmem:[#allocation29_spill] sm:$0xff] }
 0x185   : > { %v1458_v24 = vadd.f32 %v1457_v29, %v6320_v37  ;;  %5080 = vmatmul.mubr.msk.bf16.gmra.mrb[116].mxu0 %vm822_vm7, %v6174_v20 }
 0x186   : > { %4930 = vmatmul.mubr.msk.bf16.gmra.mrb[116].mxu1 %vm822_vm7, %v6174_v20  ;;  %5085 = vmatprep.mubr.msk.bf16.mxu0 %vm822_vm7, %v5962_v31 }
 0x187   : > { %v6530_v57 = vadd.f32 %v1863_v45, %v1458_v24  ;;  %4935 = vmatprep.mubr.msk.bf16.mxu1 %vm822_vm7, %v5962_v31 }
 0x188   : > { %v4823_v27 = vpop.f32.mrb[60].mxu0 }
 0x189   : > { %v4773_v49 = vpop.f32.mrb[60].mxu1  ;;  %v1875_v7 = vpop.f32.mrb[61].mxu0 }
 0x18a   : > { %v1469_v11 = vpop.f32.mrb[61].mxu1  ;;  %v4824_v42 = vpop.f32.mrb[62].mxu0  ;;  %v7143_v49 = vld [vmem:[#allocation30_spill] sm:$0xff] }
 0x18b   : > { %v1470_v37 = vadd.f32 %v1469_v11, %v6332_v1  ;;  %v4774_v25 = vpop.f32.mrb[62].mxu1  ;;  %v1878_v23 = vpop.f32.mrb[63].mxu0  ;;  %v7145_v11 = vld [vmem:[#allocation11_spill] sm:$0xff] }
 0x18c   : > { %v1480_v10 = vadd.f32 %v4774_v25, %v6336_v19  ;;  %v1472_v20 = vpop.f32.mrb[63].mxu1  ;;  %v7147_v25 = vld [vmem:[#allocation13_spill] sm:$0xff] }
 0x18d   : > { %v6536_v48 = vadd.f32 %v1875_v7, %v1470_v37  ;;  %v1473_v53 = vadd.f32 %v1472_v20, %v6342_v32  ;;  %5086 = vmatmul.mubr.msk.bf16.vlgmr.msra.gmra.mrb[72].mxu0 %vm822_vm7, %v5978_v35  ;;  %v7144_v7 = vld [vmem:[#allocation10_spill] sm:$0xff]  ;;  %v7146_v37 = vld [vmem:[#allocation12_spill] sm:$0xff] }
 0x18e   : > { %v6541_v31 = vadd.f32 %v4824_v42, %v1480_v10  ;;  %4936 = vmatmul.mubr.msk.bf16.vlgmr.msra.gmra.mrb[72].mxu1 %vm822_vm7, %v5978_v35  ;;  %5089 = vmatprep.mubr.msk.bf16.mxu0 %vm822_vm7, %v5988_v40  ;;  %v7149_v10 = vld [vmem:[#allocation15_spill] sm:$0xff]  ;;  %v7150_v20 = vld [vmem:[#allocation16_spill] sm:$0xff] }
 0x18f   : > { %v6547_v1 = vadd.f32 %v1878_v23, %v1473_v53  ;;  %4939 = vmatprep.mubr.msk.bf16.mxu1 %vm822_vm7, %v5988_v40  ;;  %v7148_v23 = vld [vmem:[#allocation14_spill] sm:$0xff]  ;;  %v7151_v53 = vld [vmem:[#allocation17_spill] sm:$0xff] }
 0x190   : > { %v4827_v19 = vpop.f32.mrb[64].mxu0 }
 0x191   : > { %v4777_v13 = vpop.f32.mrb[64].mxu1  ;;  %v1890_v51 = vpop.f32.mrb[65].mxu0 }
 0x192   : > { %v1492_v32 = vadd.f32 %v4777_v13, %v6356_v62  ;;  %v1484_v52 = vpop.f32.mrb[65].mxu1  ;;  %v4828_v28 = vpop.f32.mrb[66].mxu0  ;;  %v7141_v62 = vld [vmem:[#allocation9_spill] sm:$0xff]  ;;  %v7153_v13 = vld [vmem:[#allocation19_spill] sm:$0xff] }
 0x193   : > { %v1485_v36 = vadd.f32 %v1484_v52, %v6360_v5  ;;  %v4778_v61 = vpop.f32.mrb[66].mxu1  ;;  %v1893_v44 = vpop.f32.mrb[67].mxu0  ;;  %v7156_v52 = vld [vmem:[#allocation22_spill] sm:$0xff] }
 0x194   : > { %v6553_v35 = vadd.f32 %v4827_v19, %v1492_v32  ;;  %v1495_v15 = vadd.f32 %v4778_v61, %v6364_v12  ;;  %v1487_v26 = vpop.f32.mrb[67].mxu1  ;;  %v7152_v19 = vld [vmem:[#allocation18_spill] sm:$0xff]  ;;  %v7155_v32 = vld [vmem:[#allocation21_spill] sm:$0xff] }
 0x195   : > { %v6556_v58 = vadd.f32 %v1890_v51, %v1485_v36  ;;  %5090 = vmatmul.mubr.msk.bf16.gmra.mrb[76].mxu0 %vm822_vm7, %v6000_v41  ;;  %v7154_v51 = vld [vmem:[#allocation20_spill] sm:$0xff]  ;;  %v7159_v61 = vld [vmem:[#allocation25_spill] sm:$0xff]  ;;  %v7160_v44 = vld [vmem:[#allocation26_spill] sm:$0xff] }
 0x196   : > { %v6560_v40 = vadd.f32 %v4828_v28, %v1495_v15  ;;  %4940 = vmatmul.mubr.msk.bf16.gmra.mrb[76].mxu1 %vm822_vm7, %v6000_v41  ;;  %5093 = vmatprep.mubr.msk.bf16.mxu0 %vm822_vm7, %v7141_v62  ;;  %v7157_v28 = vld [vmem:[#allocation23_spill] sm:$0xff]  ;;  %v7158_v36 = vld [vmem:[#allocation24_spill] sm:$0xff] }
 0x197   : > { %4943 = vmatprep.mubr.msk.bf16.mxu1 %vm822_vm7, %v7141_v62  ;;  %v7161_v15 = vld [vmem:[#allocation27_spill] sm:$0xff]  ;;  %v7162_v26 = vld [vmem:[#allocation28_spill] sm:$0xff]  ;;  %v2736_v62 = vlaneseq }
 0x198   : > { %v4831_v5 = vpop.f32.mrb[68].mxu0 }
 0x199   : > { %v4781_v16 = vpop.f32.mrb[68].mxu1  ;;  %v1905_v12 = vpop.f32.mrb[69].mxu0 }
 0x19a   : > { %v1507_v18 = vadd.f32 %v4781_v16, %v7142_v43  ;;  %v1499_v38 = vpop.f32.mrb[69].mxu1  ;;  %v4832_v21 = vpop.f32.mrb[70].mxu0 }
 0x19b   : > { %v4782_v45 = vpop.f32.mrb[70].mxu1  ;;  %v1907_v29 = vpop.f32.mrb[71].mxu0 }
 0x19c   : > { %v6569_v24 = vadd.f32 %v4831_v5, %v1507_v18  ;;  %v1501_v27 = vpop.f32.mrb[71].mxu1  ;;  %v6650_v5 = vshrl.u32 %v2736_v62, 7 }
 0x19d   : > { %v1502_v41 = vadd.f32 %v1501_v27, %v7143_v49  ;;  %5094 = vmatmul.mubr.msk.bf16.gmra.mrb[80].mxu0 %vm822_vm7, %v7144_v7 }
 0x19e   : > { %4944 = vmatmul.mubr.msk.bf16.gmra.mrb[80].mxu1 %vm822_vm7, %v7144_v7  ;;  %5097 = vmatprep.mubr.msk.bf16.mxu0 %vm822_vm7, %v7145_v11  ;;  %vm3589_vm8 = vcmp.lt.s32.totalorder %v6650_v5, 4  ;;  %vm2738_vm9 = vcmp.lt.s32.totalorder %v6650_v5, 6 }
 0x19f   : > { %v6578_v42 = vadd.f32 %v1907_v29, %v1502_v41  ;;  %4947 = vmatprep.mubr.msk.bf16.mxu1 %vm822_vm7, %v7145_v11 }
 0x1a5   : > { %5098 = vmatmul.mubr.msk.bf16.gmra.mrb[84].mxu0 %vm822_vm7, %v7146_v37 }
 0x1a6   : > { %4948 = vmatmul.mubr.msk.bf16.gmra.mrb[84].mxu1 %vm822_vm7, %v7146_v37  ;;  %5101 = vmatprep.mubr.msk.bf16.mxu0 %vm822_vm7, %v7147_v25 }
 0x1a7   : > { %4951 = vmatprep.mubr.msk.bf16.mxu1 %vm822_vm7, %v7147_v25 }
 0x1ad   : > { %5102 = vmatmul.mubr.msk.bf16.gmra.mrb[88].mxu0 %vm822_vm7, %v7148_v23 }
 0x1ae   : > { %4952 = vmatmul.mubr.msk.bf16.gmra.mrb[88].mxu1 %vm822_vm7, %v7148_v23  ;;  %5105 = vmatprep.mubr.msk.bf16.mxu0 %vm822_vm7, %v7149_v10 }
 0x1af   : > { %4955 = vmatprep.mubr.msk.bf16.mxu1 %vm822_vm7, %v7149_v10 }
 0x1b5   : > { %5106 = vmatmul.mubr.msk.bf16.gmra.mrb[92].mxu0 %vm822_vm7, %v7150_v20 }
 0x1b6   : > { %4956 = vmatmul.mubr.msk.bf16.gmra.mrb[92].mxu1 %vm822_vm7, %v7150_v20  ;;  %5109 = vmatprep.mubr.msk.bf16.mxu0 %vm822_vm7, %v7151_v53 }
 0x1b7   : > { %4959 = vmatprep.mubr.msk.bf16.mxu1 %vm822_vm7, %v7151_v53 }
 0x1bd   : > { %5110 = vmatmul.mubr.msk.bf16.gmra.mrb[96].mxu0 %vm822_vm7, %v7152_v19 }
 0x1be   : > { %4960 = vmatmul.mubr.msk.bf16.gmra.mrb[96].mxu1 %vm822_vm7, %v7152_v19  ;;  %5113 = vmatprep.mubr.msk.bf16.mxu0 %vm822_vm7, %v7153_v13 }
 0x1bf   : > { %4963 = vmatprep.mubr.msk.bf16.mxu1 %vm822_vm7, %v7153_v13 }
 0x1c5   : > { %5114 = vmatmul.mubr.msk.bf16.gmra.mrb[100].mxu0 %vm822_vm7, %v7154_v51 }
 0x1c6   : > { %4964 = vmatmul.mubr.msk.bf16.gmra.mrb[100].mxu1 %vm822_vm7, %v7154_v51  ;;  %5117 = vmatprep.mubr.msk.bf16.mxu0 %vm822_vm7, %v7155_v32 }
 0x1c7   : > { %4967 = vmatprep.mubr.msk.bf16.mxu1 %vm822_vm7, %v7155_v32 }
 0x1cd   : > { %5118 = vmatmul.mubr.msk.bf16.gmra.mrb[104].mxu0 %vm822_vm7, %v7156_v52 }
 0x1ce   : > { %4968 = vmatmul.mubr.msk.bf16.gmra.mrb[104].mxu1 %vm822_vm7, %v7156_v52  ;;  %5121 = vmatprep.mubr.msk.bf16.mxu0 %vm822_vm7, %v7157_v28 }
 0x1cf   : > { %4971 = vmatprep.mubr.msk.bf16.mxu1 %vm822_vm7, %v7157_v28 }
 0x1d5   : > { %5122 = vmatmul.mubr.msk.bf16.gmra.mrb[108].mxu0 %vm822_vm7, %v7158_v36 }
 0x1d6   : > { %4972 = vmatmul.mubr.msk.bf16.gmra.mrb[108].mxu1 %vm822_vm7, %v7158_v36  ;;  %5125 = vmatprep.mubr.msk.bf16.mxu0 %vm822_vm7, %v7159_v61 }
 0x1d7   : > { %4975 = vmatprep.mubr.msk.bf16.mxu1 %vm822_vm7, %v7159_v61 }
 0x1dd   : > { %5126 = vmatmul.mubr.msk.bf16.gmra.mrb[112].mxu0 %vm822_vm7, %v7160_v44 }
 0x1de   : > { %4976 = vmatmul.mubr.msk.bf16.gmra.mrb[112].mxu1 %vm822_vm7, %v7160_v44  ;;  %5129 = vmatprep.mubr.msk.bf16.mxu0 %vm822_vm7, %v7161_v15 }
 0x1df   : > { %4979 = vmatprep.mubr.msk.bf16.mxu1 %vm822_vm7, %v7161_v15 }
 0x1e5   : > { %5130 = vmatmul.mubr.msk.bf16.gmra.mrb[116].mxu0 %vm822_vm7, %v7162_v26 }
 0x1e6   : > { %4980 = vmatmul.mubr.msk.bf16.gmra.mrb[116].mxu1 %vm822_vm7, %v7162_v26 }
 0x260   : > { %v5087_v16 = vpop.f32.mrb[72].mxu0 }
 0x261   : > { %v4937_v12 = vpop.f32.mrb[72].mxu1  ;;  %v3302_v43 = vpop.f32.mrb[73].mxu0  ;;  %v3543_v29 = vrot.slane %v5087_v16, 4 }
 0x262   : > { %v2449_v18 = vpop.f32.mrb[73].mxu1  ;;  %v5088_v38 = vpop.f32.mrb[74].mxu0  ;;  %v3541_v27 = vrot.slane %v3302_v43, 4  ;;  %v2690_v7 = vrot.slane %v4937_v12, 2 }
 0x263   : > { %v4938_v21 = vpop.f32.mrb[74].mxu1  ;;  %v3305_v45 = vpop.f32.mrb[75].mxu0  ;;  %v2688_v11 = vrot.slane %v2449_v18, 2  ;;  %v3544_v51 = vrot.slane %v5088_v38, 4 }
 0x264   : > { %v2452_v49 = vpop.f32.mrb[75].mxu1  ;;  %v3542_v41 = vrot.slane %v3305_v45, 4  ;;  %v2691_v28 = vrot.slane %v4938_v21, 2 }
 0x265   : > { %v2689_v37 = vrot.slane %v2452_v49, 2 }
 0x266   : > { %v3620_v25 = vsel %vm3589_vm8, %v3542_v41, %v3543_v29  ;;  %v3621_v23 = vsel %vm3589_vm8, %v3541_v27, %v3542_v41 }
 0x267   : > { %v2769_v10 = vsel %vm2738_vm9, %v2689_v37, %v2690_v7  ;;  %v2770_v20 = vsel %vm2738_vm9, %v2688_v11, %v2689_v37 }
 0x268   : > { %v2771_v53 = vadd.f32 %v2770_v20, %v6392_v3  ;;  %v2772_v19 = vadd.f32 %v2769_v10, %v6403_v4  ;;  %v5091_v13 = vpop.f32.mrb[76].mxu0 }
 0x269   : > { %v4941_v32 = vpop.f32.mrb[76].mxu1  ;;  %v3318_v52 = vpop.f32.mrb[77].mxu0  ;;  %v3547_v4 = vrot.slane %v5091_v13, 4 }
 0x26a   : > { %v3622_v36 = vadd.f32 %v3621_v23, %v2771_v53  ;;  %v3623_v61 = vadd.f32 %v3620_v25, %v2772_v19  ;;  %v2465_v44 = vpop.f32.mrb[77].mxu1  ;;  %v3545_v15 = vrot.slane %v3318_v52, 4  ;;  %v5092_v3 = vpop.f32.mrb[78].mxu0  ;;  %v2694_v26 = vrot.slane %v4941_v32, 2 }
 0x26b   : > { %v2692_v62 = vrot.slane %v2465_v44, 2  ;;  %v4942_v16 = vpop.f32.mrb[78].mxu1  ;;  %v3548_v12 = vrot.slane %v5092_v3, 4  ;;  %v3321_v43 = vpop.f32.mrb[79].mxu0 }
 0x26c   : > { %3655 = vst.msk [vmem:[%s6668_s13] sm:$0xff] %vm3654_vm10, %v3622_v36  ;;  %3656 = vst.msk [vmem:[%s6668_s13 + $0x8] sm:$0xff] %vm3654_vm10, %v3623_v61  ;;  %v3687_v18 = vsel %vm3654_vm10, %v3622_v36, 0.0  ;;  %v3688_v38 = vsel %vm3654_vm10, %v3623_v61, 0.0  ;;  %v3758_v21 = vmul.f32 %v3622_v36, %v3622_v36  ;;  %v3759_v45 = vmul.f32 %v3623_v61, %v3623_v61  ;;  %v2468_v29 = vpop.f32.mrb[79].mxu1 }
 0x26d   : > { %v3689_v27 = vadd.f32 %v3688_v38, %v3687_v18  ;;  %v2768_v49 = vsel %vm2738_vm9, %v2691_v28, %v2692_v62  ;;  %v3619_v41 = vsel %vm3589_vm8, %v3544_v51, %v3545_v15  ;;  %v2695_v7 = vrot.slane %v4942_v16, 2 }
 0x26e   : > { %v3790_v11 = vsel %vm3654_vm10, %v3758_v21, 0.0  ;;  %v3791_v37 = vsel %vm3654_vm10, %v3759_v45, 0.0  ;;  %v2773_v25 = vadd.f32 %v2768_v49, %v6397_v46  ;;  %v3617_v23 = vsel %vm3589_vm8, %v3547_v4, %v3548_v12 }
 0x26f   : > { %v3792_v10 = vadd.f32 %v3791_v37, %v3790_v11  ;;  %v2766_v20 = vsel %vm2738_vm9, %v2694_v26, %v2695_v7  ;;  %v2693_v53 = vrot.slane %v2468_v29, 2  ;;  %v3546_v19 = vrot.slane %v3321_v43, 4 }
 0x270   : > { %v3624_v13 = vadd.f32 %v3619_v41, %v2773_v25  ;;  %v2775_v51 = vadd.f32 %v2766_v20, %v6409_v47  ;;  %v5095_v32 = vpop.f32.mrb[80].mxu0 }
 0x271   : > { %v2767_v52 = vsel %vm2738_vm9, %v2692_v62, %v2693_v53  ;;  %v3618_v28 = vsel %vm3589_vm8, %v3545_v15, %v3546_v19  ;;  %v4945_v46 = vpop.f32.mrb[80].mxu1  ;;  %v3551_v36 = vrot.slane %v5095_v32, 4  ;;  %v3334_v61 = vpop.f32.mrb[81].mxu0 }
 0x272   : > { %3657 = vst.msk [vmem:[%s6668_s13 + $0x10] sm:$0xff] %vm3654_vm10, %v3624_v13  ;;  %v3690_v44 = vsel %vm3654_vm10, %v3624_v13, 0.0  ;;  %v3760_v3 = vmul.f32 %v3624_v13, %v3624_v13  ;;  %v3626_v26 = vadd.f32 %v3617_v23, %v2775_v51  ;;  %v2774_v4 = vadd.f32 %v2767_v52, %v6412_v33  ;;  %v2481_v47 = vpop.f32.mrb[81].mxu1  ;;  %v5096_v16 = vpop.f32.mrb[82].mxu0 }
 0x273   : > { %v3691_v43 = vadd.f32 %v3690_v44, %v3689_v27  ;;  %v2698_v18 = vrot.slane %v4945_v46, 2  ;;  %v2696_v62 = vrot.slane %v2481_v47, 2  ;;  %v3549_v38 = vrot.slane %v3334_v61, 4  ;;  %v4946_v15 = vpop.f32.mrb[82].mxu1  ;;  %v3337_v21 = vpop.f32.mrb[83].mxu0 }
 0x274   : > { %v3793_v45 = vsel %vm3654_vm10, %v3760_v3, 0.0  ;;  %3659 = vst.msk [vmem:[%s6668_s13 + $0x20] sm:$0xff] %vm3654_vm10, %v3626_v26  ;;  %v3694_v29 = vsel %vm3654_vm10, %v3626_v26, 0.0  ;;  %v3762_v49 = vmul.f32 %v3626_v26, %v3626_v26  ;;  %v3625_v41 = vadd.f32 %v3618_v28, %v2774_v4  ;;  %v2484_v11 = vpop.f32.mrb[83].mxu1 }
 0x275   : > { %v3794_v37 = vadd.f32 %v3793_v45, %v3792_v10  ;;  %v2765_v33 = vsel %vm2738_vm9, %v2695_v7, %v2696_v62  ;;  %v3616_v27 = vsel %vm3589_vm8, %v3548_v12, %v3549_v38  ;;  %v2699_v25 = vrot.slane %v4946_v15, 2 }
 0x276   : > { %v3797_v23 = vsel %vm3654_vm10, %v3762_v49, 0.0  ;;  %3658 = vst.msk [vmem:[%s6668_s13 + $0x18] sm:$0xff] %vm3654_vm10, %v3625_v41  ;;  %v3692_v20 = vsel %vm3654_vm10, %v3625_v41, 0.0  ;;  %v3761_v53 = vmul.f32 %v3625_v41, %v3625_v41  ;;  %v2776_v19 = vadd.f32 %v2765_v33, %v6416_v50 }
 0x277   : > { %v3693_v13 = vadd.f32 %v3692_v20, %v3691_v43  ;;  %v2763_v10 = vsel %vm2738_vm9, %v2698_v18, %v2699_v25  ;;  %v3552_v51 = vrot.slane %v5096_v16, 4  ;;  %v2697_v7 = vrot.slane %v2484_v11, 2 }
 0x278   : > { %v3795_v32 = vsel %vm3654_vm10, %v3761_v53, 0.0  ;;  %v3627_v12 = vadd.f32 %v3616_v27, %v2776_v19  ;;  %v2778_v52 = vadd.f32 %v2763_v10, %v6425_v34  ;;  %v3550_v28 = vrot.slane %v3337_v21, 4  ;;  %v5099_v46 = vpop.f32.mrb[84].mxu0 }
 0x279   : > { %v3796_v61 = vadd.f32 %v3795_v32, %v3794_v37  ;;  %v3695_v44 = vadd.f32 %v3694_v29, %v3693_v13  ;;  %v3614_v3 = vsel %vm3589_vm8, %v3551_v36, %v3552_v51  ;;  %v2764_v50 = vsel %vm2738_vm9, %v2697_v7, %v2698_v18  ;;  %v4949_v26 = vpop.f32.mrb[84].mxu1  ;;  %v3350_v4 = vpop.f32.mrb[85].mxu0 }
 0x27a   : > { %3660 = vst.msk [vmem:[%s6668_s13 + $0x28] sm:$0xff] %vm3654_vm10, %v3627_v12  ;;  %v3696_v47 = vsel %vm3654_vm10, %v3627_v12, 0.0  ;;  %v3763_v16 = vmul.f32 %v3627_v12, %v3627_v12  ;;  %v3629_v43 = vadd.f32 %v3614_v3, %v2778_v52  ;;  %v2777_v34 = vadd.f32 %v2764_v50, %v6434_v56  ;;  %v2497_v62 = vpop.f32.mrb[85].mxu1  ;;  %v6721_v38 = vpop.f32.mrb[86].mxu0 }
 0x27b   : > { %v3697_v15 = vadd.f32 %v3696_v47, %v3695_v44  ;;  %v3798_v21 = vadd.f32 %v3797_v23, %v3796_v61  ;;  %v3615_v18 = vsel %vm3589_vm8, %v3550_v28, %v3551_v36  ;;  %v4950_v45 = vpop.f32.mrb[86].mxu1  ;;  %v3353_v29 = vpop.f32.mrb[87].mxu0  ;;  %v2702_v56 = vrot.slane %v4949_v26, 2 }
 0x27c   : > { %v3799_v49 = vsel %vm3654_vm10, %v3763_v16, 0.0  ;;  %3662 = vst.msk [vmem:[%s6668_s13 + $0x38] sm:$0xff] %vm3654_vm10, %v3629_v43  ;;  %v3765_v41 = vmul.f32 %v3629_v43, %v3629_v43  ;;  %v3628_v11 = vadd.f32 %v3615_v18, %v2777_v34  ;;  %v2500_v37 = vpop.f32.mrb[87].mxu1  ;;  %v3700_v27 = vsel %vm3654_vm10, %v3629_v43, 0.0 }
 0x27d   : > { %v3800_v33 = vadd.f32 %v3799_v49, %v3798_v21  ;;  %v3555_v20 = vrot.slane %v5099_v46, 4  ;;  %v2700_v53 = vrot.slane %v2497_v62, 2  ;;  %v2701_v19 = vrot.slane %v2500_v37, 2 }
 0x27e   : > { %3661 = vst.msk [vmem:[%s6668_s13 + $0x30] sm:$0xff] %vm3654_vm10, %v3628_v11  ;;  %v3698_v25 = vsel %vm3654_vm10, %v3628_v11, 0.0  ;;  %v3764_v23 = vmul.f32 %v3628_v11, %v3628_v11  ;;  %v3554_v13 = vrot.slane %v3353_v29, 4  ;;  %v3803_v10 = vsel %vm3654_vm10, %v3765_v41, 0.0 }
 0x27f   : > { %v3699_v36 = vadd.f32 %v3698_v25, %v3697_v15  ;;  %v3553_v7 = vrot.slane %v3350_v4, 4  ;;  %v2703_v32 = vrot.slane %v4950_v45, 2  ;;  %v2761_v28 = vsel %vm2738_vm9, %v2701_v19, %v2702_v56 }
 0x280   : > { %v3801_v51 = vsel %vm3654_vm10, %v3764_v23, 0.0  ;;  %v5103_v12 = vpop.f32.mrb[88].mxu0  ;;  %v2762_v61 = vsel %vm2738_vm9, %v2700_v53, %v2701_v19  ;;  %v3612_v46 = vsel %vm3589_vm8, %v3554_v13, %v3555_v20  ;;  %v2780_v26 = vadd.f32 %v2761_v28, %v6451_v60 }
 0x281   : > { %v3802_v52 = vadd.f32 %v3801_v51, %v3800_v33  ;;  %v4953_v44 = vpop.f32.mrb[88].mxu1  ;;  %v3366_v3 = vpop.f32.mrb[89].mxu0  ;;  %v2779_v50 = vadd.f32 %v2762_v61, %v6440_v6  ;;  %v3613_v4 = vsel %vm3589_vm8, %v3553_v7, %v3554_v13  ;;  %v3701_v47 = vadd.f32 %v3700_v27, %v3699_v36 }
 0x282   : > { %v2513_v16 = vpop.f32.mrb[89].mxu1  ;;  %v6744_v43 = vpop.f32.mrb[90].mxu0  ;;  %v3556_v34 = vrot.slane %v6721_v38, 4  ;;  %v2706_v15 = vrot.slane %v4953_v44, 2  ;;  %v3631_v29 = vadd.f32 %v3612_v46, %v2780_v26  ;;  %v3557_v60 = vrot.slane %v3366_v3, 4 }
 0x283   : > { %v3804_v62 = vadd.f32 %v3803_v10, %v3802_v52  ;;  %v2704_v21 = vrot.slane %v2513_v16, 2  ;;  %v6747_v18 = vpop.f32.mrb[90].mxu1  ;;  %v3369_v45 = vpop.f32.mrb[91].mxu0  ;;  %v3630_v6 = vadd.f32 %v3613_v4, %v2779_v50  ;;  %v3559_v11 = vrot.slane %v5103_v12, 4 }
 0x284   : > { %v2707_v49 = vrot.slane %v6747_v18, 2  ;;  %v2516_v41 = vpop.f32.mrb[91].mxu1  ;;  %v3560_v33 = vrot.slane %v6744_v43, 4  ;;  %3664 = vst.msk [vmem:[%s6668_s13 + $0x48] sm:$0xff] %vm3654_vm10, %v3631_v29  ;;  %v3767_v25 = vmul.f32 %v3631_v29, %v3631_v29  ;;  %v3558_v23 = vrot.slane %v3369_v45, 4 }
 0x285   : > { %v2760_v37 = vsel %vm2738_vm9, %v2703_v32, %v2704_v21  ;;  %v2705_v38 = vrot.slane %v2516_v41, 2  ;;  %3663 = vst.msk [vmem:[%s6668_s13 + $0x40] sm:$0xff] %vm3654_vm10, %v3630_v6  ;;  %v3702_v56 = vsel %vm3654_vm10, %v3630_v6, 0.0  ;;  %v3766_v27 = vmul.f32 %v3630_v6, %v3630_v6 }
 0x286   : > { %v3703_v20 = vadd.f32 %v3702_v56, %v3701_v47  ;;  %v2781_v36 = vadd.f32 %v2760_v37, %v6445_v63  ;;  %v3611_v53 = vsel %vm3589_vm8, %v3556_v34, %v3557_v60  ;;  %v2758_v19 = vsel %vm2738_vm9, %v2706_v15, %v2707_v49 }
 0x287   : > { %v3704_v13 = vsel %vm3654_vm10, %v3631_v29, 0.0  ;;  %v3805_v10 = vsel %vm3654_vm10, %v3766_v27, 0.0  ;;  %v2783_v51 = vadd.f32 %v2758_v19, %v6457_v2  ;;  %v3609_v7 = vsel %vm3589_vm8, %v3559_v11, %v3560_v33 }
 0x288   : > { %v5107_v32 = vpop.f32.mrb[92].mxu0  ;;  %v3705_v12 = vadd.f32 %v3704_v13, %v3703_v20  ;;  %v3806_v52 = vadd.f32 %v3805_v10, %v3804_v62  ;;  %v3632_v63 = vadd.f32 %v3611_v53, %v2781_v36  ;;  %v2759_v28 = vsel %vm2738_vm9, %v2704_v21, %v2705_v38 }
 0x289   : > { %v4957_v61 = vpop.f32.mrb[92].mxu1  ;;  %v3382_v46 = vpop.f32.mrb[93].mxu0  ;;  %v3807_v44 = vsel %vm3654_vm10, %v3767_v25, 0.0  ;;  %v3634_v3 = vadd.f32 %v3609_v7, %v2783_v51  ;;  %v2782_v50 = vadd.f32 %v2759_v28, %v6460_v55  ;;  %v3610_v2 = vsel %vm3589_vm8, %v3557_v60, %v3558_v23 }
 0x28a   : > { %v2529_v26 = vpop.f32.mrb[93].mxu1  ;;  %v5108_v4 = vpop.f32.mrb[94].mxu0  ;;  %v3808_v47 = vadd.f32 %v3807_v44, %v3806_v52  ;;  %3665 = vst.msk [vmem:[%s6668_s13 + $0x50] sm:$0xff] %vm3654_vm10, %v3632_v63  ;;  %v3706_v16 = vsel %vm3654_vm10, %v3632_v63, 0.0  ;;  %v3768_v43 = vmul.f32 %v3632_v63, %v3632_v63  ;;  %v2710_v34 = vrot.slane %v4957_v61, 2 }
 0x28b   : > { %v4958_v62 = vpop.f32.mrb[94].mxu1  ;;  %v3385_v15 = vpop.f32.mrb[95].mxu0  ;;  %v3707_v21 = vadd.f32 %v3706_v16, %v3705_v12  ;;  %3667 = vst.msk [vmem:[%s6668_s13 + $0x60] sm:$0xff] %vm3654_vm10, %v3634_v3  ;;  %v3710_v55 = vsel %vm3654_vm10, %v3634_v3, 0.0  ;;  %v3633_v18 = vadd.f32 %v3610_v2, %v2782_v50  ;;  %v3563_v45 = vrot.slane %v5107_v32, 4 }
 0x28c   : > { %v2532_v6 = vpop.f32.mrb[95].mxu1  ;;  %v3809_v29 = vsel %vm3654_vm10, %v3768_v43, 0.0  ;;  %v2708_v60 = vrot.slane %v2529_v26, 2  ;;  %v3561_v41 = vrot.slane %v3382_v46, 4  ;;  %v2711_v11 = vrot.slane %v4958_v62, 2 }
 0x28d   : > { %v3810_v37 = vadd.f32 %v3809_v29, %v3808_v47  ;;  %v3770_v38 = vmul.f32 %v3634_v3, %v3634_v3  ;;  %3666 = vst.msk [vmem:[%s6668_s13 + $0x58] sm:$0xff] %vm3654_vm10, %v3633_v18  ;;  %v3708_v56 = vsel %vm3654_vm10, %v3633_v18, 0.0  ;;  %v3769_v27 = vmul.f32 %v3633_v18, %v3633_v18 }
 0x28e   : > { %v3709_v25 = vadd.f32 %v3708_v56, %v3707_v21  ;;  %v2757_v23 = vsel %vm2738_vm9, %v2707_v49, %v2708_v60  ;;  %v3608_v20 = vsel %vm3589_vm8, %v3560_v33, %v3561_v41  ;;  %v2755_v36 = vsel %vm2738_vm9, %v2710_v34, %v2711_v11 }
 0x28f   : > { %v3811_v53 = vsel %vm3654_vm10, %v3769_v27, 0.0  ;;  %v2784_v19 = vadd.f32 %v2757_v23, %v6464_v14  ;;  %v2786_v13 = vadd.f32 %v2755_v36, %v6473_v59  ;;  %v3564_v10 = vrot.slane %v5108_v4, 4 }
 0x290   : > { %v5111_v51 = vpop.f32.mrb[96].mxu0  ;;  %v3812_v7 = vadd.f32 %v3811_v53, %v3810_v37  ;;  %v3711_v32 = vadd.f32 %v3710_v55, %v3709_v25  ;;  %v2709_v12 = vrot.slane %v2532_v6, 2  ;;  %v3562_v52 = vrot.slane %v3385_v15, 4 }
 0x291   : > { %v4961_v49 = vpop.f32.mrb[96].mxu1  ;;  %v3398_v63 = vpop.f32.mrb[97].mxu0  ;;  %v3813_v33 = vsel %vm3654_vm10, %v3770_v38, 0.0  ;;  %v3635_v28 = vadd.f32 %v3608_v20, %v2784_v19  ;;  %v3606_v61 = vsel %vm3589_vm8, %v3563_v45, %v3564_v10  ;;  %v3567_v21 = vrot.slane %v5111_v51, 4 }
 0x292   : > { %v2545_v46 = vpop.f32.mrb[97].mxu1  ;;  %v6796_v14 = vpop.f32.mrb[98].mxu0  ;;  %v3814_v59 = vadd.f32 %v3813_v33, %v3812_v7  ;;  %v3637_v44 = vadd.f32 %v3606_v61, %v2786_v13  ;;  %v2756_v3 = vsel %vm2738_vm9, %v2709_v12, %v2710_v34  ;;  %v3607_v50 = vsel %vm3589_vm8, %v3562_v52, %v3563_v45 }
 0x293   : > { %v6802_v2 = vpop.f32.mrb[98].mxu1  ;;  %v3401_v26 = vpop.f32.mrb[99].mxu0  ;;  %3668 = vst.msk [vmem:[%s6668_s13 + $0x68] sm:$0xff] %vm3654_vm10, %v3635_v28  ;;  %v3712_v4 = vsel %vm3654_vm10, %v3635_v28, 0.0  ;;  %v3771_v47 = vmul.f32 %v3635_v28, %v3635_v28  ;;  %v2785_v16 = vadd.f32 %v2756_v3, %v6482_v22  ;;  %v2714_v43 = vrot.slane %v4961_v49, 2 }
 0x294   : > { %v2548_v62 = vpop.f32.mrb[99].mxu1  ;;  %v3713_v15 = vadd.f32 %v3712_v4, %v3711_v32  ;;  %3670 = vst.msk [vmem:[%s6668_s13 + $0x78] sm:$0xff] %vm3654_vm10, %v3637_v44  ;;  %v3773_v34 = vmul.f32 %v3637_v44, %v3637_v44  ;;  %v2712_v55 = vrot.slane %v2545_v46, 2  ;;  %v3716_v45 = vsel %vm3654_vm10, %v3637_v44, 0.0 }
 0x295   : > { %v3815_v18 = vsel %vm3654_vm10, %v3771_v47, 0.0  ;;  %v3636_v6 = vadd.f32 %v3607_v50, %v2785_v16  ;;  %v3565_v29 = vrot.slane %v3398_v63, 4  ;;  %v2715_v41 = vrot.slane %v6802_v2, 2 }
 0x296   : > { %v3816_v60 = vadd.f32 %v3815_v18, %v3814_v59  ;;  %v2713_v11 = vrot.slane %v2548_v62, 2  ;;  %v3566_v22 = vrot.slane %v3401_v26, 4  ;;  %v3819_v37 = vsel %vm3654_vm10, %v3773_v34, 0.0 }
 0x297   : > { %3669 = vst.msk [vmem:[%s6668_s13 + $0x70] sm:$0xff] %vm3654_vm10, %v3636_v6  ;;  %v3714_v38 = vsel %vm3654_vm10, %v3636_v6, 0.0  ;;  %v3772_v56 = vmul.f32 %v3636_v6, %v3636_v6  ;;  %v3568_v27 = vrot.slane %v6796_v14, 4 }
 0x298   : > { %v5115_v25 = vpop.f32.mrb[100].mxu0  ;;  %v3715_v23 = vadd.f32 %v3714_v38, %v3713_v15  ;;  %v2753_v20 = vsel %vm2738_vm9, %v2713_v11, %v2714_v43  ;;  %v2754_v36 = vsel %vm2738_vm9, %v2712_v55, %v2713_v11  ;;  %v3604_v53 = vsel %vm3589_vm8, %v3566_v22, %v3567_v21 }
 0x299   : > { %v4965_v19 = vpop.f32.mrb[100].mxu1  ;;  %v6824_v13 = vpop.f32.mrb[101].mxu0  ;;  %v3817_v10 = vsel %vm3654_vm10, %v3772_v56, 0.0  ;;  %v2787_v51 = vadd.f32 %v2754_v36, %v6488_v54  ;;  %v2788_v7 = vadd.f32 %v2753_v20, %v6499_v8  ;;  %v3605_v32 = vsel %vm3589_vm8, %v3565_v29, %v3566_v22 }
 0x29a   : > { %v2561_v12 = vpop.f32.mrb[101].mxu1  ;;  %v6831_v52 = vpop.f32.mrb[102].mxu0  ;;  %v3818_v49 = vadd.f32 %v3817_v10, %v3816_v60  ;;  %v3717_v63 = vadd.f32 %v3716_v45, %v3715_v23  ;;  %v2718_v33 = vrot.slane %v4965_v19, 2  ;;  %v3571_v28 = vrot.slane %v5115_v25, 4 }
 0x29b   : > { %v4966_v61 = vpop.f32.mrb[102].mxu1  ;;  %v3417_v46 = vpop.f32.mrb[103].mxu0  ;;  %v3638_v14 = vadd.f32 %v3605_v32, %v2787_v51  ;;  %v3639_v59 = vadd.f32 %v3604_v53, %v2788_v7  ;;  %v2716_v44 = vrot.slane %v2561_v12, 2  ;;  %v3569_v54 = vrot.slane %v6824_v13, 4 }
 0x29c   : > { %v2564_v8 = vpop.f32.mrb[103].mxu1  ;;  %v3820_v3 = vadd.f32 %v3819_v37, %v3818_v49  ;;  %v2719_v50 = vrot.slane %v4966_v61, 2  ;;  %v3572_v2 = vrot.slane %v6831_v52, 4 }
 0x29d   : > { %v2717_v26 = vrot.slane %v2564_v8, 2  ;;  %3671 = vst.msk [vmem:[%s6668_s13 + $0x80] sm:$0xff] %vm3654_vm10, %v3638_v14  ;;  %3672 = vst.msk [vmem:[%s6668_s13 + $0x88] sm:$0xff] %vm3654_vm10, %v3639_v59  ;;  %v3718_v4 = vsel %vm3654_vm10, %v3638_v14, 0.0  ;;  %v3720_v47 = vsel %vm3654_vm10, %v3639_v59, 0.0  ;;  %v3774_v16 = vmul.f32 %v3638_v14, %v3638_v14 }
 0x29e   : > { %v3775_v43 = vmul.f32 %v3639_v59, %v3639_v59  ;;  %v3719_v62 = vadd.f32 %v3718_v4, %v3717_v63  ;;  %v2752_v15 = vsel %vm2738_vm9, %v2715_v41, %v2716_v44  ;;  %v3603_v34 = vsel %vm3589_vm8, %v3568_v27, %v3569_v54 }
 0x29f   : > { %v2750_v21 = vsel %vm2738_vm9, %v2718_v33, %v2719_v50  ;;  %v3821_v55 = vsel %vm3654_vm10, %v3774_v16, 0.0  ;;  %v2789_v45 = vadd.f32 %v2752_v15, %v6493_v39  ;;  %v3601_v41 = vsel %vm3589_vm8, %v3571_v28, %v3572_v2 }
 0x2a0   : > { %v3823_v18 = vsel %vm3654_vm10, %v3775_v43, 0.0  ;;  %v2791_v6 = vadd.f32 %v2750_v21, %v6505_v17  ;;  %v5119_v29 = vpop.f32.mrb[104].mxu0  ;;  %v3721_v60 = vadd.f32 %v3720_v47, %v3719_v62  ;;  %v3822_v11 = vadd.f32 %v3821_v55, %v3820_v3 }
 0x2a1   : > { %v2751_v22 = vsel %vm2738_vm9, %v2716_v44, %v2717_v26  ;;  %v4969_v37 = vpop.f32.mrb[104].mxu1  ;;  %v3430_v38 = vpop.f32.mrb[105].mxu0  ;;  %v3640_v56 = vadd.f32 %v3603_v34, %v2789_v45  ;;  %v3570_v39 = vrot.slane %v3417_v46, 4  ;;  %v3575_v53 = vrot.slane %v5119_v29, 4 }
 0x2a2   : > { %v3642_v27 = vadd.f32 %v3601_v41, %v2791_v6  ;;  %v2790_v25 = vadd.f32 %v2751_v22, %v6508_v30  ;;  %v2577_v23 = vpop.f32.mrb[105].mxu1  ;;  %v5120_v17 = vpop.f32.mrb[106].mxu0  ;;  %v3824_v20 = vadd.f32 %v3823_v18, %v3822_v11  ;;  %v2722_v36 = vrot.slane %v4969_v37, 2 }
 0x2a3   : > { %v2720_v19 = vrot.slane %v2577_v23, 2  ;;  %v4970_v13 = vpop.f32.mrb[106].mxu1  ;;  %v3433_v10 = vpop.f32.mrb[107].mxu0  ;;  %3673 = vst.msk [vmem:[%s6668_s13 + $0x90] sm:$0xff] %vm3654_vm10, %v3640_v56  ;;  %v3722_v51 = vsel %vm3654_vm10, %v3640_v56, 0.0  ;;  %v3776_v7 = vmul.f32 %v3640_v56, %v3640_v56  ;;  %v3602_v49 = vsel %vm3589_vm8, %v3569_v54, %v3570_v39 }
 0x2a4   : > { %3675 = vst.msk [vmem:[%s6668_s13 + $0xa0] sm:$0xff] %vm3654_vm10, %v3642_v27  ;;  %v3726_v32 = vsel %vm3654_vm10, %v3642_v27, 0.0  ;;  %v3778_v30 = vmul.f32 %v3642_v27, %v3642_v27  ;;  %v2580_v12 = vpop.f32.mrb[107].mxu1  ;;  %v3723_v52 = vadd.f32 %v3722_v51, %v3721_v60  ;;  %v3573_v33 = vrot.slane %v3430_v38, 4 }
 0x2a5   : > { %v2749_v63 = vsel %vm2738_vm9, %v2719_v50, %v2720_v19  ;;  %v3825_v28 = vsel %vm3654_vm10, %v3776_v7, 0.0  ;;  %v3641_v46 = vadd.f32 %v3602_v49, %v2790_v25  ;;  %v2723_v8 = vrot.slane %v4970_v13, 2 }
 0x2a6   : > { %v3829_v61 = vsel %vm3654_vm10, %v3778_v30, 0.0  ;;  %v2792_v14 = vadd.f32 %v2749_v63, %v6512_v0  ;;  %v3826_v59 = vadd.f32 %v3825_v28, %v3824_v20  ;;  %v3600_v44 = vsel %vm3589_vm8, %v3572_v2, %v3573_v33 }
 0x2a7   : > { %v3576_v3 = vrot.slane %v5120_v17, 4  ;;  %3674 = vst.msk [vmem:[%s6668_s13 + $0x98] sm:$0xff] %vm3654_vm10, %v3641_v46  ;;  %v3724_v54 = vsel %vm3654_vm10, %v3641_v46, 0.0  ;;  %v3777_v50 = vmul.f32 %v3641_v46, %v3641_v46  ;;  %v2721_v4 = vrot.slane %v2580_v12, 2 }
 0x2a8   : > { %v3643_v26 = vadd.f32 %v3600_v44, %v2792_v14  ;;  %v5123_v47 = vpop.f32.mrb[108].mxu0  ;;  %v3725_v16 = vadd.f32 %v3724_v54, %v3723_v52  ;;  %v2747_v43 = vsel %vm2738_vm9, %v2722_v36, %v2723_v8  ;;  %v3574_v62 = vrot.slane %v3433_v10, 4 }
 0x2a9   : > { %v3598_v0 = vsel %vm3589_vm8, %v3575_v53, %v3576_v3  ;;  %v4973_v2 = vpop.f32.mrb[108].mxu1  ;;  %v3446_v15 = vpop.f32.mrb[109].mxu0  ;;  %v3827_v34 = vsel %vm3654_vm10, %v3777_v50, 0.0  ;;  %v2794_v18 = vadd.f32 %v2747_v43, %v6521_v9  ;;  %v2748_v11 = vsel %vm2738_vm9, %v2721_v4, %v2722_v36 }
 0x2aa   : > { %3676 = vst.msk [vmem:[%s6668_s13 + $0xa8] sm:$0xff] %vm3654_vm10, %v3643_v26  ;;  %v3728_v21 = vsel %vm3654_vm10, %v3643_v26, 0.0  ;;  %v3779_v55 = vmul.f32 %v3643_v26, %v3643_v26  ;;  %v2593_v45 = vpop.f32.mrb[109].mxu1  ;;  %v6883_v6 = vpop.f32.mrb[110].mxu0  ;;  %v3828_v29 = vadd.f32 %v3827_v34, %v3826_v59  ;;  %v3727_v60 = vadd.f32 %v3726_v32, %v3725_v16 }
 0x2ab   : > { %v3599_v41 = vsel %vm3589_vm8, %v3574_v62, %v3575_v53  ;;  %v4974_v22 = vpop.f32.mrb[110].mxu1  ;;  %v3449_v37 = vpop.f32.mrb[111].mxu0  ;;  %v3645_v56 = vadd.f32 %v3598_v0, %v2794_v18  ;;  %v2793_v27 = vadd.f32 %v2748_v11, %v6530_v57  ;;  %v2726_v9 = vrot.slane %v4973_v2, 2 }
 0x2ac   : > { %v3831_v38 = vsel %vm3654_vm10, %v3779_v55, 0.0  ;;  %v2596_v25 = vpop.f32.mrb[111].mxu1  ;;  %v3729_v39 = vadd.f32 %v3728_v21, %v3727_v60  ;;  %v3830_v23 = vadd.f32 %v3829_v61, %v3828_v29  ;;  %v3579_v17 = vrot.slane %v5123_v47, 4 }
 0x2ad   : > { %v2724_v20 = vrot.slane %v2593_v45, 2  ;;  %3678 = vst.msk [vmem:[%s6668_s13 + $0xb8] sm:$0xff] %vm3654_vm10, %v3645_v56  ;;  %v3732_v36 = vsel %vm3654_vm10, %v3645_v56, 0.0  ;;  %v3781_v19 = vmul.f32 %v3645_v56, %v3645_v56  ;;  %v3644_v53 = vadd.f32 %v3599_v41, %v2793_v27 }
 0x2ae   : > { %v3577_v13 = vrot.slane %v3446_v15, 4  ;;  %v3832_v10 = vadd.f32 %v3831_v38, %v3830_v23  ;;  %v2727_v51 = vrot.slane %v4974_v22, 2  ;;  %v3580_v7 = vrot.slane %v6883_v6, 4 }
 0x2af   : > { %v2725_v32 = vrot.slane %v2596_v25, 2  ;;  %v3835_v57 = vsel %vm3654_vm10, %v3781_v19, 0.0  ;;  %3677 = vst.msk [vmem:[%s6668_s13 + $0xb0] sm:$0xff] %vm3654_vm10, %v3644_v53  ;;  %v3730_v30 = vsel %vm3654_vm10, %v3644_v53, 0.0  ;;  %v3780_v12 = vmul.f32 %v3644_v53, %v3644_v53 }
 0x2b0   : > { %v3578_v52 = vrot.slane %v3449_v37, 4  ;;  %v5127_v49 = vpop.f32.mrb[112].mxu0  ;;  %v3731_v63 = vadd.f32 %v3730_v30, %v3729_v39 }
 0x2b1   : > { %v2745_v33 = vsel %vm2738_vm9, %v2725_v32, %v2726_v9  ;;  %v2746_v28 = vsel %vm2738_vm9, %v2724_v20, %v2725_v32  ;;  %v4977_v61 = vpop.f32.mrb[112].mxu1  ;;  %v3583_v46 = vrot.slane %v5127_v49, 4  ;;  %v6903_v14 = vpop.f32.mrb[113].mxu0  ;;  %v3833_v59 = vsel %vm3654_vm10, %v3780_v12, 0.0 }
 0x2b2   : > { %v2795_v44 = vadd.f32 %v2746_v28, %v6536_v48  ;;  %v2796_v8 = vadd.f32 %v2745_v33, %v6547_v1  ;;  %v3596_v3 = vsel %vm3589_vm8, %v3578_v52, %v3579_v17  ;;  %v2609_v54 = vpop.f32.mrb[113].mxu1  ;;  %v6910_v50 = vpop.f32.mrb[114].mxu0  ;;  %v3834_v26 = vadd.f32 %v3833_v59, %v3832_v10 }
 0x2b3   : > { %v3597_v4 = vsel %vm3589_vm8, %v3577_v13, %v3578_v52  ;;  %v3733_v47 = vadd.f32 %v3732_v36, %v3731_v63  ;;  %v2730_v16 = vrot.slane %v4977_v61, 2  ;;  %v4978_v43 = vpop.f32.mrb[114].mxu1  ;;  %v3465_v0 = vpop.f32.mrb[115].mxu0  ;;  %v2728_v2 = vrot.slane %v2609_v54, 2 }
 0x2b4   : > { %v3646_v62 = vadd.f32 %v3597_v4, %v2795_v44  ;;  %v3647_v48 = vadd.f32 %v3596_v3, %v2796_v8  ;;  %v3581_v1 = vrot.slane %v6903_v14, 4  ;;  %v2612_v15 = vpop.f32.mrb[115].mxu1  ;;  %v3836_v34 = vadd.f32 %v3835_v57, %v3834_v26 }
 0x2b5   : > { %v2731_v21 = vrot.slane %v4978_v43, 2  ;;  %v3584_v55 = vrot.slane %v6910_v50, 4  ;;  %v2729_v18 = vrot.slane %v2612_v15, 2  ;;  %v2744_v41 = vsel %vm2738_vm9, %v2727_v51, %v2728_v2 }
 0x2b6   : > { %3679 = vst.msk [vmem:[%s6668_s13 + $0xc0] sm:$0xff] %vm3654_vm10, %v3646_v62  ;;  %3680 = vst.msk [vmem:[%s6668_s13 + $0xc8] sm:$0xff] %vm3654_vm10, %v3647_v48  ;;  %v3734_v45 = vsel %vm3654_vm10, %v3646_v62, 0.0  ;;  %v3736_v6 = vsel %vm3654_vm10, %v3647_v48, 0.0  ;;  %v3782_v29 = vmul.f32 %v3646_v62, %v3646_v62  ;;  %v3783_v60 = vmul.f32 %v3647_v48, %v3647_v48 }
 0x2b7   : > { %v3735_v11 = vadd.f32 %v3734_v45, %v3733_v47  ;;  %v3595_v22 = vsel %vm3589_vm8, %v3580_v7, %v3581_v1  ;;  %v2742_v37 = vsel %vm2738_vm9, %v2730_v16, %v2731_v21  ;;  %v2797_v27 = vadd.f32 %v2744_v41, %v6541_v31 }
 0x2b8   : > { %v3837_v38 = vsel %vm3654_vm10, %v3782_v29, 0.0  ;;  %v3839_v56 = vsel %vm3654_vm10, %v3783_v60, 0.0  ;;  %v2799_v9 = vadd.f32 %v2742_v37, %v6553_v35  ;;  %v5131_v25 = vpop.f32.mrb[116].mxu0  ;;  %v3593_v17 = vsel %vm3589_vm8, %v3583_v46, %v3584_v55 }
 0x2b9   : > { %v3737_v39 = vadd.f32 %v3736_v6, %v3735_v11  ;;  %v3838_v23 = vadd.f32 %v3837_v38, %v3836_v34  ;;  %v2743_v20 = vsel %vm2738_vm9, %v2728_v2, %v2729_v18  ;;  %v4981_v36 = vpop.f32.mrb[116].mxu1  ;;  %v3478_v19 = vpop.f32.mrb[117].mxu0  ;;  %v3648_v53 = vadd.f32 %v3595_v22, %v2797_v27 }
 0x2ba   : > { %v3650_v13 = vadd.f32 %v3593_v17, %v2799_v9  ;;  %v2798_v10 = vadd.f32 %v2743_v20, %v6556_v58  ;;  %v3582_v31 = vrot.slane %v3465_v0, 4  ;;  %v2625_v51 = vpop.f32.mrb[117].mxu1  ;;  %v5132_v35 = vpop.f32.mrb[118].mxu0  ;;  %v2734_v32 = vrot.slane %v4981_v36, 2 }
 0x2bb   : > { %v3840_v7 = vadd.f32 %v3839_v56, %v3838_v23  ;;  %v2732_v57 = vrot.slane %v2625_v51, 2  ;;  %v4982_v30 = vpop.f32.mrb[118].mxu1  ;;  %v3481_v12 = vpop.f32.mrb[119].mxu0  ;;  %3681 = vst.msk [vmem:[%s6668_s13 + $0xd0] sm:$0xff] %vm3654_vm10, %v3648_v53  ;;  %v3738_v52 = vsel %vm3654_vm10, %v3648_v53, 0.0  ;;  %v3784_v49 = vmul.f32 %v3648_v53, %v3648_v53 }
 0x2bc   : > { %3683 = vst.msk [vmem:[%s6668_s13 + $0xe0] sm:$0xff] %vm3654_vm10, %v3650_v13  ;;  %v3742_v63 = vsel %vm3654_vm10, %v3650_v13, 0.0  ;;  %v3587_v33 = vrot.slane %v5131_v25, 4  ;;  %v2628_v58 = vpop.f32.mrb[119].mxu1  ;;  %v3739_v28 = vadd.f32 %v3738_v52, %v3737_v39  ;;  %v3594_v61 = vsel %vm3589_vm8, %v3581_v1, %v3582_v31 }
 0x2bd   : > { %v2741_v46 = vsel %vm2738_vm9, %v2731_v21, %v2732_v57  ;;  %v3585_v14 = vrot.slane %v3478_v19, 4  ;;  %v3841_v59 = vsel %vm3654_vm10, %v3784_v49, 0.0  ;;  %v3786_v44 = vmul.f32 %v3650_v13, %v3650_v13 }
 0x2be   : > { %v3649_v8 = vadd.f32 %v3594_v61, %v2798_v10  ;;  %v2800_v3 = vadd.f32 %v2741_v46, %v6560_v40  ;;  %v3842_v54 = vadd.f32 %v3841_v59, %v3840_v7  ;;  %v2735_v26 = vrot.slane %v4982_v30, 2 }
 0x2bf   : > { %v3592_v50 = vsel %vm3589_vm8, %v3584_v55, %v3585_v14  ;;  %v3588_v4 = vrot.slane %v5132_v35, 4  ;;  %v2733_v0 = vrot.slane %v2628_v58, 2  ;;  %v3586_v2 = vrot.slane %v3481_v12, 4 }
 0x2c0   : > { %3682 = vst.msk [vmem:[%s6668_s13 + $0xd8] sm:$0xff] %vm3654_vm10, %v3649_v8  ;;  %v3740_v47 = vsel %vm3654_vm10, %v3649_v8, 0.0  ;;  %v3785_v16 = vmul.f32 %v3649_v8, %v3649_v8  ;;  %v3651_v43 = vadd.f32 %v3592_v50, %v2800_v3  ;;  %v2739_v48 = vsel %vm2738_vm9, %v2734_v32, %v2735_v26 }
 0x2c1   : > { %v3741_v62 = vadd.f32 %v3740_v47, %v3739_v28  ;;  %v3590_v40 = vsel %vm3589_vm8, %v3587_v33, %v3588_v4  ;;  %v2802_v21 = vadd.f32 %v2739_v48, %v6569_v24  ;;  %v2740_v45 = vsel %vm2738_vm9, %v2733_v0, %v2734_v32 }
 0x2c2   : > { %v3843_v1 = vsel %vm3654_vm10, %v3785_v16, 0.0  ;;  %3684 = vst.msk [vmem:[%s6668_s13 + $0xe8] sm:$0xff] %vm3654_vm10, %v3651_v43  ;;  %v3744_v15 = vsel %vm3654_vm10, %v3651_v43, 0.0  ;;  %v3787_v34 = vmul.f32 %v3651_v43, %v3651_v43  ;;  %v3591_v6 = vsel %vm3589_vm8, %v3586_v2, %v3587_v33 }
 0x2c3   : > { %v3844_v55 = vadd.f32 %v3843_v1, %v3842_v54  ;;  %v3743_v18 = vadd.f32 %v3742_v63, %v3741_v62  ;;  %v3845_v29 = vsel %vm3654_vm10, %v3786_v44, 0.0  ;;  %v3653_v11 = vadd.f32 %v3590_v40, %v2802_v21 }
 0x2c4   : > { %v3847_v60 = vsel %vm3654_vm10, %v3787_v34, 0.0  ;;  %v2801_v41 = vadd.f32 %v2740_v45, %v6578_v42 }
 0x2c5   : > { %v3745_v22 = vadd.f32 %v3744_v15, %v3743_v18  ;;  %v3846_v37 = vadd.f32 %v3845_v29, %v3844_v55  ;;  %3686 = vst.msk [vmem:[%s6668_s13 + $0xf8] sm:$0xff] %vm3654_vm10, %v3653_v11  ;;  %v3789_v56 = vmul.f32 %v3653_v11, %v3653_v11  ;;  %v3748_v25 = vsel %vm3654_vm10, %v3653_v11, 0.0 }
 0x2c6   : > { %v3652_v24 = vadd.f32 %v3591_v6, %v2801_v41 }
 0x2c7   : > { %v3848_v38 = vadd.f32 %v3847_v60, %v3846_v37  ;;  %v3851_v17 = vsel %vm3654_vm10, %v3789_v56, 0.0 }
 0x2c8   : > { %3685 = vst.msk [vmem:[%s6668_s13 + $0xf0] sm:$0xff] %vm3654_vm10, %v3652_v24  ;;  %v3746_v5 = vsel %vm3654_vm10, %v3652_v24, 0.0  ;;  %v3788_v27 = vmul.f32 %v3652_v24, %v3652_v24  ;;  %s5476_s13 = scalar_lea.vmem %s5475_s7, 32 }
 0x2c9   : > { %v3747_v9 = vadd.f32 %v3746_v5, %v3745_v22  ;;  %p5478_p2 = scmp.lt.s32.totalorder %s5476_s13, %s5470_s11 }
 0x2ca   : > { %v3849_v39 = vsel %vm3654_vm10, %v3788_v27, 0.0 }
 0x2cb   : > { %v3749_v42 = vadd.f32 %v3748_v25, %v3747_v9  ;;  %v3850_v23 = vadd.f32 %v3849_v39, %v3848_v38  ;;  %p5479_p3 = por %p5478_p2, %p5477_p1 }
 0x2cd   : > { %v3750_v20 = vrot.slane %v3749_v42, 4  ;;  %v3852_v36 = vadd.f32 %v3851_v17, %v3850_v23  ;;  %p5480_p5 = pnand %p5479_p3, %p5473_p0 }
 0x2cf   : > { %v3751_v19 = vadd.f32 %v3750_v20, %v3749_v42  ;;  %v3853_v53 = vrot.slane %v3852_v36, 4 }
 0x2d1   : > { %v3752_v13 = vrot.slane %v3751_v19, 2  ;;  %v3854_v10 = vadd.f32 %v3853_v53, %v3852_v36 }
 0x2d3   : > { %v3753_v31 = vadd.f32 %v3752_v13, %v3751_v19  ;;  %v3855_v51 = vrot.slane %v3854_v10, 2 }
 0x2d5   : > { %v3754_v35 = vrot.slane %v3753_v31, 1  ;;  %v3856_v7 = vadd.f32 %v3855_v51, %v3854_v10 }
 0x2d7   : > { %v3755_v32 = vadd.f32 %v3754_v35, %v3753_v31  ;;  %v3857_v57 = vrot.slane %v3856_v7, 1 }
 0x2d9   : > { %3757 = vst.msk [vmem:[%s223_s22] sm:$0x1] %vm3756_vm11, %v3755_v32  ;;  %v3858_v30 = vadd.f32 %v3857_v57, %v3856_v7 }
 0x2da   : > { %5483 = shalt.err (!%p5480_p5)
}
 0x2db   : > { %s5484_s21 = scalar_lea.hbm %s6989_s6, 16  ;;  %s5488_s5 = scalar_lea.hbm %s7073_s3, 32 }
 0x2dc   : > { %p5485_p6 = scmp.ne.s32.totalorder %s6989_s6, %s5484_s21  ;;  %p5489_p10 = scmp.lt.u32.totalorder %s6989_s6, %s7073_s3 }
 0x2dd   : > { %p5490_p11 = scmp.lt.u32.totalorder %s5488_s5, %s5484_s21  ;;  %p5492_p13 = scmp.lt.u32.totalorder %s5484_s21, %s6989_s6 }
 0x2de   : > { %p5486_p7 = pnand %p5485_p6, %p5650_p4 }
 0x2df   : > { %p5491_p12 = por %p5490_p11, %p5489_p10 }
 0x2e0   : > { %p5487_p9 = pneg %p5486_p7 }
 0x2e1   : > { %p5493_p0 = por %p5492_p13, %p5491_p12 }
 0x2e3   : > { %p5494_p1 = pnand %p5493_p0, %p5487_p9 }
 0x2e5   : > { %5497 = shalt.err (!%p5494_p1)
}
 0x2e6   : > { %5337 = dma.vmem_to_hbm [thread:$0]  (%p5650_p4), %s6991_s24, 16, %s6989_s6, %s3871_s10   ;;  %3859 = vst.msk [vmem:[%s229_s26] sm:$0x1] %vm3756_vm11, %v3858_v30 }
 0x2e7   : > { %s3875_s11 = scalar_lea.sflag [#allocation6], %s6979_s14  ;;  %s5498_s12 = scalar_lea.vmem %s6999_s29, 16 }
 0x2e8   : > { %p5499_p2 = scmp.ne.s32.totalorder %s6999_s29, %s5498_s12  ;;  %s5584_s7 = smov [#allocation5]  }
 0x2e9   : > { %s5502_s13 = sshll.u32 %s5584_s7, 4  ;;  %s5503_s13 = int_to_ptr.vmem [resolvable:$false] %s5502_s13 }
 0x2ea   : > { %p5500_p3 = pnand %p5499_p2, %p5650_p4  ;;  %s5504_s21 = scalar_lea.vmem %s5503_s13, 32 }
 0x2eb   : > { %p5505_p6 = scmp.lt.s32.totalorder %s6999_s29, %s5503_s13  ;;  %p5506_p7 = scmp.lt.s32.totalorder %s5504_s21, %s5498_s12 }
 0x2ec   : > { %p5501_p5 = pneg %p5500_p3 }
 0x2ed   : > { %p5507_p9 = por %p5506_p7, %p5505_p6 }
 0x2ef   : > { %p5508_p10 = pnand %p5507_p9, %p5501_p5 }
 0x2f1   : > { %5511 = shalt.err (!%p5508_p10)
}
 0x2f2   : > { %s5512_s14 = scalar_lea.hbm %s6997_s9, 16  ;;  %s5516_s6 = scalar_lea.hbm %s7074_s4, 32 }
 0x2f3   : > { %p5513_p11 = scmp.ne.s32.totalorder %s6997_s9, %s5512_s14  ;;  %p5517_p0 = scmp.lt.u32.totalorder %s6997_s9, %s7074_s4 }
 0x2f4   : > { %p5518_p1 = scmp.lt.u32.totalorder %s5516_s6, %s5512_s14  ;;  %p5520_p3 = scmp.lt.u32.totalorder %s5512_s14, %s6997_s9 }
 0x2f5   : > { %p5514_p12 = pnand %p5513_p11, %p5650_p4 }
 0x2f6   : > { %p5519_p2 = por %p5518_p1, %p5517_p0 }
 0x2f7   : > { %p5515_p13 = pneg %p5514_p12 }
 0x2f8   : > { %p5521_p5 = por %p5520_p3, %p5519_p2 }
 0x2fa   : > { %p5522_p6 = pnand %p5521_p5, %p5515_p13 }
 0x2fc   : > { %5525 = shalt.err (!%p5522_p6)
}
 0x2fd   : > { %5338 = dma.vmem_to_hbm [thread:$0]  (%p5650_p4), %s6999_s29, 16, %s6997_s9, %s3875_s11  }
 0x2fe PF: > { %p5348_p7 = scmp.ge.s32.totalorder %s5580_s20, 2  ;;  %s3931_s30 = sand.u32 1, %s5560_s15  }
 0x2ff   : > { %s3932_s5 = scalar_lea.sflag [#allocation4], %s3931_s30 }
 0x300   : > { %p5342_p9 = pnand %p5348_p7, %p5657_p8 }
 0x302   : > { %5551 = dma.done.wait (!%p5342_p9), %s3932_s5, 16  }
 0x303   : > { %5553 = vsyncadd (!%p5342_p9), %s3932_s5, 4294967280  ;;  %s3940_s18 = scalar_lea.sflag [#allocation6], %s3931_s30 }
 0x304   : > { %5555 = dma.done.wait (!%p5342_p9), %s3940_s18, 16  }
 0x305   : > { %5557 = vsyncadd (!%p5342_p9), %s3940_s18, 4294967280  ;;  %s21_s20 = sadd.s32 1, %s5580_s20   ;;  %s7163_s15 = smov %s5564_s16 }
 0x306   : > { %p18_p10 = scmp.ge.s32.totalorder %s21_s20, 4   ;;  %s7164_s16 = smov %s5568_s17 }
 0x307   : > { %s7165_s17 = smov %s5663_s28  ;;  %s7166_s18 = smov %s5576_s19 }
 0x308   : > { %s7167_s19 = smov %s7169_s23  ;;  %20 = sbr.rel (!%p18_p10) target bundleno = 6 (0x6), region = 109 }
 0x30f   :  { %3944 = vsyncpa [#allocation4], 1 }
 0x310   :  { %3946 = vsyncpa [#allocation4 + $0x1], 1 }
 0x311   :  { %3947 = vsyncpa [#allocation6], 1 }
 0x312   :  { %3949 = vsyncpa [#allocation6 + $0x1], 1 }

</bundles_post_ra>
